<compile_context>
chip_gen: v5e
topology: v5e:2x2
jax: 0.10.0
libtpu: 0.0.40
codegen_flags: <defaults>
</compile_context>

<pallas_src>
import functools
import math

import jax
import jax.numpy as jnp
from jax import lax
from jax.experimental import pallas as pl
from jax.experimental.pallas import tpu as pltpu

LANE = 128  # TPU lane width; all channel dims are zero-padded to this.


def _round_up(x, m):
    return (x + m - 1) // m * m


# ---------------------------------------------------------------------------
# Kernel 1: fused Conv1d (K-tap accumulation) + bias + optional LeakyReLU +
#           optional per-channel affine (BatchNorm1d eval).
#           Grid = (B,); one batch element per step, weights stay resident.
# ---------------------------------------------------------------------------
def _conv1d_kernel(x_ref, w_ref, b_ref, s_ref, t_ref, o_ref, *, K, L_out, leaky, affine):
    acc = jnp.zeros((L_out, o_ref.shape[-1]), jnp.float32)
    for k in range(K):  # static unroll (K = 5); reads the activation once
        xk = x_ref[0, pl.ds(k, L_out), :].astype(jnp.bfloat16)
        acc = acc + jnp.dot(xk, w_ref[k], preferred_element_type=jnp.float32)
    y = acc + b_ref[...]
    if leaky:
        y = jnp.where(y > 0, y, 0.2 * y)           # LeakyReLU(0.2)
    if affine:
        y = y * s_ref[...] + t_ref[...]            # BatchNorm1d (eval) folded to affine
    o_ref[0] = y


def conv1d_fused(x_padded, w_taps, bias, scale, shift, *, L_out, leaky, affine):
    """x_padded: (B, L_out+K-1, C) f32 (time pre-padded, channels lane-padded);
    w_taps: (K, C, N) bf16 tap-major; bias/scale/shift: (1, N) f32."""
    B, L_in, C = x_padded.shape
    K, _, N = w_taps.shape
    kernel = functools.partial(_conv1d_kernel, K=K, L_out=L_out, leaky=leaky, affine=affine)
    return pl.pallas_call(
        kernel,
        out_shape=jax.ShapeDtypeStruct((B, L_out, N), jnp.float32),
        grid=(B,),
        in_specs=[
            pl.BlockSpec((1, L_in, C), lambda b: (b, 0, 0)),
            pl.BlockSpec((K, C, N), lambda b: (0, 0, 0)),   # weight resident across grid
            pl.BlockSpec((1, N), lambda b: (0, 0)),
            pl.BlockSpec((1, N), lambda b: (0, 0)),
            pl.BlockSpec((1, N), lambda b: (0, 0)),
        ],
        out_specs=pl.BlockSpec((1, L_out, N), lambda b: (b, 0, 0)),
        compiler_params=pltpu.CompilerParams(
            dimension_semantics=("parallel",),
            vmem_limit_bytes=32 * 1024 * 1024,
        ),
    )(x_padded, w_taps, bias, scale, shift)


# ---------------------------------------------------------------------------
# Kernel 2: row/K-tiled matmul + bias (linear embedding), lane-dense output.
#           Pattern P1+P3: M tiles "parallel", K reduction "arbitrary" with
#           an f32 VMEM accumulator.
# ---------------------------------------------------------------------------
def _mm_kernel(x_ref, w_ref, b_ref, o_ref, acc_ref):
    @pl.when(pl.program_id(1) == 0)
    def _():
        acc_ref[...] = jnp.zeros_like(acc_ref)

    acc_ref[...] += jnp.dot(x_ref[...].astype(jnp.bfloat16), w_ref[...],
                            preferred_element_type=jnp.float32)

    @pl.when(pl.program_id(1) == pl.num_programs(1) - 1)
    def _():
        o_ref[...] = acc_ref[...] + b_ref[...]


def matmul_bias(x, w_bf16, bias, *, tile_m=256, tile_k=512):
    M, K = x.shape
    _, N = w_bf16.shape
    tile_m = min(tile_m, _round_up(M, 8))
    tile_k = min(tile_k, K)
    assert K % tile_k == 0
    M_pad = _round_up(M, tile_m)
    if M_pad != M:
        x = jnp.pad(x, ((0, M_pad - M), (0, 0)))
    out = pl.pallas_call(
        _mm_kernel,
        out_shape=jax.ShapeDtypeStruct((M_pad, N), jnp.float32),
        grid=(M_pad // tile_m, K // tile_k),
        in_specs=[
            pl.BlockSpec((tile_m, tile_k), lambda i, k: (i, k)),
            pl.BlockSpec((tile_k, N), lambda i, k: (k, 0)),
            pl.BlockSpec((1, N), lambda i, k: (0, 0)),
        ],
        out_specs=pl.BlockSpec((tile_m, N), lambda i, k: (i, 0)),
        scratch_shapes=[pltpu.VMEM((tile_m, N), jnp.float32)],
        compiler_params=pltpu.CompilerParams(
            dimension_semantics=("parallel", "arbitrary"),
            vmem_limit_bytes=32 * 1024 * 1024,
        ),
    )(x, w_bf16, bias)
    return out[:M]


# ---------------------------------------------------------------------------
# Kernel 3: fully fused post-LN TransformerEncoderLayer (eval: dropout = id).
#           Grid = (B,); everything stays in VMEM/vregs for one batch element.
#           Attention uses a head-masked full-128-lane contraction (no hd=8
#           contraction, no reshape/transpose head shuffle, no HBM round-trip).
# ---------------------------------------------------------------------------
def _tlayer_kernel(x_ref, wqkv_ref, bqkv_ref, wo_ref, bo_ref, g1_ref, be1_ref,
                   wf1_ref, bf1_ref, wf2_ref, bf2_ref, g2_ref, be2_ref, o_ref,
                   *, nh, hd, h_real):
    T = x_ref.shape[1]
    C = x_ref.shape[-1]
    x = x_ref[0]                                            # (T, C) f32
    xb = x.astype(jnp.bfloat16)

    qkv = jnp.dot(xb, wqkv_ref[...], preferred_element_type=jnp.float32) + bqkv_ref[...]
    q, k, v = qkv[:, :C], qkv[:, C:2 * C], qkv[:, 2 * C:]
    kb = k.astype(jnp.bfloat16)

    scale = 1.0 / math.sqrt(hd)
    col = lax.broadcasted_iota(jnp.int32, (1, C), 1)
    dn = (((1,), (1,)), ((), ()))                           # q @ k^T (contract lanes)

    # TODO(synk): for large T, tile the KV axis with an online-softmax (flash)
    # accumulator; at T=8 the full (T,T) score block trivially fits VMEM.
    o_acc = jnp.zeros((T, C), jnp.float32)
    for h in range(nh):                                     # static unroll, nh=4
        m = (col >= h * hd) & (col < (h + 1) * hd)          # head channel mask
        qh = jnp.where(m, q, 0.0).astype(jnp.bfloat16)
        s = lax.dot_general(qh, kb, dn, preferred_element_type=jnp.float32) * scale
        smax = jnp.max(s, axis=-1, keepdims=True)
        p = jnp.exp(s - smax)
        p = p * pl.reciprocal(jnp.sum(p, axis=-1, keepdims=True), approx=True)
        vh = jnp.where(m, v, 0.0).astype(jnp.bfloat16)
        o_acc = o_acc + jnp.dot(p.astype(jnp.bfloat16), vh,
                                preferred_element_type=jnp.float32)

    attn = jnp.dot(o_acc.astype(jnp.bfloat16), wo_ref[...],
                   preferred_element_type=jnp.float32) + bo_ref[...]

    def layernorm(hh, g, b):
        # Padded lanes of hh are exactly zero, so 128-lane sums == real-H sums.
        mean = jnp.sum(hh, axis=-1, keepdims=True) * (1.0 / h_real)
        var = jnp.sum(hh * hh, axis=-1, keepdims=True) * (1.0 / h_real) - mean * mean
        inv = lax.rsqrt(var + 1e-5)
        return (hh - mean) * inv * g + b                    # g,b zero-padded -> pads stay 0

    h1 = layernorm(x + attn, g1_ref[...], be1_ref[...])

    ff = jnp.dot(h1.astype(jnp.bfloat16), wf1_ref[...],
                 preferred_element_type=jnp.float32) + bf1_ref[...]
    # TODO(synk): tanh-form GELU (EUP); torch uses exact erf GELU (|err| ~1e-3).
    ff = 0.5 * ff * (1.0 + jnp.tanh(0.7978845608028654 * (ff + 0.044715 * ff * ff * ff)))
    ff2 = jnp.dot(ff.astype(jnp.bfloat16), wf2_ref[...],
                  preferred_element_type=jnp.float32) + bf2_ref[...]

    o_ref[0] = layernorm(h1 + ff2, g2_ref[...], be2_ref[...])


def transformer_layer(x, lp, *, nh, h_real):
    B, T, C = x.shape
    hd = h_real // nh
    ops = [lp["w_qkv"], lp["b_qkv"], lp["w_o"], lp["b_o"], lp["ln1_g"], lp["ln1_b"],
           lp["w_ff1"], lp["b_ff1"], lp["w_ff2"], lp["b_ff2"], lp["ln2_g"], lp["ln2_b"]]
    w_specs = [pl.BlockSpec(o.shape, lambda b: (0, 0)) for o in ops]
    return pl.pallas_call(
        functools.partial(_tlayer_kernel, nh=nh, hd=hd, h_real=h_real),
        out_shape=jax.ShapeDtypeStruct((B, T, C), jnp.float32),
        grid=(B,),
        in_specs=[pl.BlockSpec((1, T, C), lambda b: (b, 0, 0))] + w_specs,
        out_specs=pl.BlockSpec((1, T, C), lambda b: (b, 0, 0)),
        compiler_params=pltpu.CompilerParams(
            dimension_semantics=("parallel",),
            vmem_limit_bytes=32 * 1024 * 1024,
        ),
    )(x, *ops)


# ---------------------------------------------------------------------------
# Forward pass (glue is layout-preserving, channels-last, lane-padded)
# ---------------------------------------------------------------------------
def transformer_decoder_forward(z, P, cfg):
    B, Tq, H = z.shape
    C = LANE
    x = jnp.pad(z, ((0, 0), (0, 0), (0, C - H)))            # lane-pad channels

    # expander[0]: ConvTranspose1d(H,H,5,s2,p2,op1,'zeros') + LeakyReLU(0.2) + BN
    K, stride, padding, out_pad = 5, 2, 2, 1
    L_out = (Tq - 1) * stride - 2 * padding + K + out_pad
    L_up = (Tq - 1) * stride + 1
    x_up = jnp.zeros((B, L_up, C), x.dtype).at[:, ::stride, :].set(x)
    left = K - 1 - padding
    right = L_out + K - 1 - left - L_up
    xp = jnp.pad(x_up, ((0, 0), (left, right), (0, 0)))
    e0 = P["expander"][0]
    h = conv1d_fused(xp, e0["w"], e0["b"], e0["scale"], e0["shift"],
                     L_out=L_out, leaky=True, affine=True)

    # expander[1:]: Conv1d(H,H,5,s1,p2,'replicate') + LeakyReLU + BN, then
    # repeat_interleave(2, dim=1)
    for layer in P["expander"][1:]:
        L = h.shape[1]
        xp = jnp.pad(h, ((0, 0), (2, 2), (0, 0)), mode="edge")
        h = conv1d_fused(xp, layer["w"], layer["b"], layer["scale"], layer["shift"],
                         L_out=L, leaky=True, affine=True)
        h = jnp.repeat(h, 2, axis=1)

    # decoder_linear_embedding (per-token Linear H->H).
    # TODO(synk): LinearEmbedding class not shown in the spec; treated as nn.Linear.
    B2, T, _ = h.shape
    h = matmul_bias(h.reshape(B2 * T, C), P["emb_w"], P["emb_b"]).reshape(B2, T, C)

    # pos_encoding != 'learned' -> no positional embedding;
    # temporal_bias != 'alibi_future' -> mask is None.
    for lp in P["layers"]:
        h = transformer_layer(h, lp, nh=cfg["num_attention_heads"], h_real=H)

    # cross_smooth_layer: Conv1d(H -> out_dim, 5, padding=2, zero padding)
    xp = jnp.pad(h, ((0, 0), (2, 2), (0, 0)))
    out = conv1d_fused(xp, P["cross_w"], P["cross_b"], P["cross_dummy"], P["cross_dummy"],
                       L_out=T, leaky=False, affine=False)
    return out[:, :, :cfg["in_dim"]]


# ---------------------------------------------------------------------------
# Deterministic synthetic parameters, prepared ahead of time in TPU-friendly
# layout: lane-padded to 128, conv weights tap-major (K, Cin, Cout), matmul
# weights bf16, BatchNorm(eval) pre-reduced to per-channel scale/shift.
# ---------------------------------------------------------------------------
def init_params(key, cfg):
    H, D, I = cfg["hidden_size"], cfg["in_dim"], cfg["intermediate_size"]
    Q, NL = cfg["quant_factor"], cfg["num_hidden_layers"]
    C = LANE
    keys = iter(jax.random.split(key, 512))

    def rnd(shape, scale=0.05):
        return jax.random.normal(next(keys), shape, jnp.float32) * scale

    def pad_vec(v):
        return jnp.pad(v, (0, C - v.shape[0])).reshape(1, C)

    def pad_mat(w):
        return jnp.pad(w, ((0, C - w.shape[0]), (0, C - w.shape[1])))

    def bn_affine(c):
        gamma, beta = 1.0 + rnd((c,)), rnd((c,))
        rm, rv = rnd((c,)), 1.0 + jnp.abs(rnd((c,)))
        scale = gamma / jnp.sqrt(rv + 1e-5)
        shift = beta - rm * scale
        return pad_vec(scale), pad_vec(shift)

    def conv_taps(w_torch):        # Conv1d weight (Cout, Cin, K) -> (K, C, C) bf16
        taps = jnp.transpose(w_torch, (2, 1, 0))
        taps = jnp.pad(taps, ((0, 0), (0, C - taps.shape[1]), (0, C - taps.shape[2])))
        return taps.astype(jnp.bfloat16)

    def convT_taps(w_torch):       # ConvTranspose1d weight (Cin, Cout, K) -> equiv. dense conv
        taps = jnp.transpose(w_torch[:, :, ::-1], (2, 0, 1))  # flip taps, tap-major
        taps = jnp.pad(taps, ((0, 0), (0, C - taps.shape[1]), (0, C - taps.shape[2])))
        return taps.astype(jnp.bfloat16)

    P = {"expander": []}
    s0, t0 = bn_affine(H)
    P["expander"].append({"w": convT_taps(rnd((H, H, 5))), "b": pad_vec(rnd((H,))),
                          "scale": s0, "shift": t0})
    for _ in range(1, Q):
        s, t = bn_affine(H)
        P["expander"].append({"w": conv_taps(rnd((H, H, 5))), "b": pad_vec(rnd((H,))),
                              "scale": s, "shift": t})

    P["emb_w"] = pad_mat(rnd((H, H))).astype(jnp.bfloat16)
    P["emb_b"] = pad_vec(rnd((H,)))

    def tlayer():
        return {
            "w_qkv": jnp.concatenate(
                [pad_mat(rnd((H, H))), pad_mat(rnd((H, H))), pad_mat(rnd((H, H)))],
                axis=1).astype(jnp.bfloat16),
            "b_qkv": jnp.concatenate(
                [pad_vec(rnd((H,))), pad_vec(rnd((H,))), pad_vec(rnd((H,)))], axis=1),
            "w_o": pad_mat(rnd((H, H))).astype(jnp.bfloat16),
            "b_o": pad_vec(rnd((H,))),
            "ln1_g": pad_vec(jnp.ones((H,), jnp.float32)),
            "ln1_b": pad_vec(jnp.zeros((H,), jnp.float32)),
            "w_ff1": pad_mat(rnd((H, I))).astype(jnp.bfloat16),
            "b_ff1": pad_vec(rnd((I,))),
            "w_ff2": pad_mat(rnd((I, H))).astype(jnp.bfloat16),
            "b_ff2": pad_vec(rnd((H,))),
            "ln2_g": pad_vec(jnp.ones((H,), jnp.float32)),
            "ln2_b": pad_vec(jnp.zeros((H,), jnp.float32)),
        }

    P["layers"] = [tlayer() for _ in range(NL)]
    P["cross_w"] = conv_taps(rnd((D, H, 5)))
    P["cross_b"] = pad_vec(rnd((D,)))
    P["cross_dummy"] = jnp.zeros((1, C), jnp.float32)
    return P


# ---------------------------------------------------------------------------
if __name__ == "__main__":
    cfg = {
        "in_dim": 16,
        "hidden_size": 32,
        "quant_factor": 2,
        "sequence_length": 8,
        "num_attention_heads": 4,
        "intermediate_size": 64,
        "num_hidden_layers": 1,
        "pos_encoding": "none",      # not 'learned' -> no PositionEmbedding
        "temporal_bias": "none",     # not 'alibi_future' -> no attention mask
    }
    key = jax.random.PRNGKey(0)
    kz, kp = jax.random.split(key)
    B = 2
    Tq = cfg["sequence_length"] // (2 ** cfg["quant_factor"])     # latent length = 2

    z = jax.random.normal(kz, (B, Tq, cfg["hidden_size"]), jnp.float32)
    P = init_params(kp, cfg)

    fwd = jax.jit(functools.partial(transformer_decoder_forward, cfg=cfg))
    out = fwd(z, P)
    jax.block_until_ready(out)
    assert out.shape == (B, cfg["sequence_length"], cfg["in_dim"])
    print("KERNEL_OK")
</pallas_src>

<mosaic_0001>
module attributes {stable_mosaic.version = 11 : i64} {
  func.func @_mm_kernel(%arg0: i32, %arg1: i32, %arg2: memref<16x128xf32, #tpu.memory_space<vmem>>, %arg3: memref<128x128xbf16, #tpu.memory_space<vmem>>, %arg4: memref<1x128xf32, #tpu.memory_space<vmem>>, %arg5: memref<16x128xf32, #tpu.memory_space<vmem>>, %arg6: memref<16x128xf32, #tpu.memory_space<vmem>>) attributes {dimension_semantics = [#tpu.dimension_semantics<parallel>, #tpu.dimension_semantics<arbitrary>], iteration_bounds = array<i64: 1, 1>, scalar_prefetch = 0 : i64, scratch_operands = 1 : i64, tpu.core_type = #tpu.core_type<tc>, window_params = [{transform_indices = @transform_0, window_bounds = array<i64: 16, 128>}, {transform_indices = @transform_1, window_bounds = array<i64: 128, 128>}, {pipeline_mode = #tpu.pipeline_mode<synchronous>, transform_indices = @transform_2, window_bounds = array<i64: 1, 128>}, {transform_indices = @transform_3, window_bounds = array<i64: 16, 128>}]} {
    %c0_i32 = arith.constant 0 : i32
    %0 = arith.cmpi eq, %arg1, %c0_i32 : i32
    %1 = arith.extui %0 : i1 to i32
    %c0_i32_0 = arith.constant 0 : i32
    %2 = arith.cmpi ne, %1, %c0_i32_0 : i32
    scf.if %2 {
      %cst_10 = arith.constant 0.000000e+00 : f32
      %13 = vector.broadcast %cst_10 : f32 to vector<16x128xf32>
      %c0_11 = arith.constant 0 : index
      %c0_12 = arith.constant 0 : index
      %14 = vector.load %arg6[%c0_11, %c0_12] : memref<16x128xf32, #tpu.memory_space<vmem>>, vector<16x128xf32>
      tpu.vector_store %arg6[%c0_11, %c0_12], %13 {strides = array<i32>} : memref<16x128xf32, #tpu.memory_space<vmem>>, vector<16x128xf32>,
    } else {
    }
    %c0 = arith.constant 0 : index
    %c0_1 = arith.constant 0 : index
    %3 = vector.load %arg6[%c0, %c0_1] : memref<16x128xf32, #tpu.memory_space<vmem>>, vector<16x128xf32>
    %c0_2 = arith.constant 0 : index
    %c0_3 = arith.constant 0 : index
    %4 = vector.load %arg2[%c0_2, %c0_3] : memref<16x128xf32, #tpu.memory_space<vmem>>, vector<16x128xf32>
    %5 = arith.truncf %4 : vector<16x128xf32> to vector<16x128xbf16>
    %c0_4 = arith.constant 0 : index
    %c0_5 = arith.constant 0 : index
    %6 = vector.load %arg3[%c0_4, %c0_5] : memref<128x128xbf16, #tpu.memory_space<vmem>>, vector<128x128xbf16>
    %cst = arith.constant dense<0.000000e+00> : vector<16x128xf32>
    %7 = tpu.matmul %5, %6, %cst {dimension_numbers = #tpu.dot_dimension_numbers<[1], [0], [0], [1], [0, 0, 1, 1], [], []>} : vector<16x128xbf16>, vector<128x128xbf16>, vector<16x128xf32> -> vector<16x128xf32>
    %8 = arith.addf %3, %7 : vector<16x128xf32>
    %c0_6 = arith.constant 0 : index
    %c0_7 = arith.constant 0 : index
    %9 = vector.load %arg6[%c0_6, %c0_7] : memref<16x128xf32, #tpu.memory_space<vmem>>, vector<16x128xf32>
    tpu.vector_store %arg6[%c0_6, %c0_7], %8 {strides = array<i32>} : memref<16x128xf32, #tpu.memory_space<vmem>>, vector<16x128xf32>,
    %c0_i32_8 = arith.constant 0 : i32
    %10 = arith.cmpi eq, %arg1, %c0_i32_8 : i32
    %11 = arith.extui %10 : i1 to i32
    %c0_i32_9 = arith.constant 0 : i32
    %12 = arith.cmpi ne, %11, %c0_i32_9 : i32
    scf.if %12 {
      %c0_10 = arith.constant 0 : index
      %c0_11 = arith.constant 0 : index
      %13 = vector.load %arg6[%c0_10, %c0_11] : memref<16x128xf32, #tpu.memory_space<vmem>>, vector<16x128xf32>
      %c0_12 = arith.constant 0 : index
      %c0_13 = arith.constant 0 : index
      %14 = vector.load %arg4[%c0_12, %c0_13] : memref<1x128xf32, #tpu.memory_space<vmem>>, vector<1x128xf32>
      %15 = vector.broadcast %14 : vector<1x128xf32> to vector<16x128xf32>
      %16 = arith.addf %13, %15 : vector<16x128xf32>
      %c0_14 = arith.constant 0 : index
      %c0_15 = arith.constant 0 : index
      %17 = vector.load %arg5[%c0_14, %c0_15] : memref<16x128xf32, #tpu.memory_space<vmem>>, vector<16x128xf32>
      tpu.vector_store %arg5[%c0_14, %c0_15], %16 {strides = array<i32>} : memref<16x128xf32, #tpu.memory_space<vmem>>, vector<16x128xf32>,
    } else {
    }
    return
  }
  func.func @transform_0(%arg0: i32, %arg1: i32) -> (i32, i32) {
    %c0_i32 = arith.constant 0 : i32
    return %arg0, %arg1 : i32, i32
  }
  func.func @transform_1(%arg0: i32, %arg1: i32) -> (i32, i32) {
    %c0_i32 = arith.constant 0 : i32
    %c0_i32_0 = arith.constant 0 : i32
    return %arg1, %c0_i32 : i32, i32
  }
  func.func @transform_2(%arg0: i32, %arg1: i32) -> (i32, i32) {
    %c0_i32 = arith.constant 0 : i32
    %c0_i32_0 = arith.constant 0 : i32
    %c0_i32_1 = arith.constant 0 : i32
    return %c0_i32, %c0_i32_0 : i32, i32
  }
  func.func @transform_3(%arg0: i32, %arg1: i32) -> (i32, i32) {
    %c0_i32 = arith.constant 0 : i32
    %c0_i32_0 = arith.constant 0 : i32
    return %arg0, %c0_i32 : i32, i32
  }
}

module attributes {stable_mosaic.version = 11 : i64} {
  func.func @_conv1d_kernel(%arg0: i32, %arg1: memref<1x8x128xf32, #tpu.memory_space<vmem>>, %arg2: memref<5x128x128xbf16, #tpu.memory_space<vmem>>, %arg3: memref<1x128xf32, #tpu.memory_space<vmem>>, %arg4: memref<1x128xf32, #tpu.memory_space<vmem>>, %arg5: memref<1x128xf32, #tpu.memory_space<vmem>>, %arg6: memref<1x4x128xf32, #tpu.memory_space<vmem>>) attributes {dimension_semantics = [#tpu.dimension_semantics<parallel>], iteration_bounds = array<i64: 2>, scalar_prefetch = 0 : i64, scratch_operands = 0 : i64, tpu.core_type = #tpu.core_type<tc>, window_params = [{transform_indices = @transform_0, window_bounds = array<i64: 1, 8, 128>}, {pipeline_mode = #tpu.pipeline_mode<synchronous>, transform_indices = @transform_1, window_bounds = array<i64: 5, 128, 128>}, {pipeline_mode = #tpu.pipeline_mode<synchronous>, transform_indices = @transform_2, window_bounds = array<i64: 1, 128>}, {pipeline_mode = #tpu.pipeline_mode<synchronous>, transform_indices = @transform_3, window_bounds = array<i64: 1, 128>}, {pipeline_mode = #tpu.pipeline_mode<synchronous>, transform_indices = @transform_4, window_bounds = array<i64: 1, 128>}, {transform_indices = @transform_5, window_bounds = array<i64: 1, 4, 128>}]} {
    %cst = arith.constant 0.000000e+00 : f32
    %0 = vector.broadcast %cst : f32 to vector<4x128xf32>
    %c0 = arith.constant 0 : index
    %c0_0 = arith.constant 0 : index
    %c0_1 = arith.constant 0 : index
    %1 = vector.load %arg1[%c0, %c0_0, %c0_1] : memref<1x8x128xf32, #tpu.memory_space<vmem>>, vector<1x4x128xf32>
    %2 = vector.shape_cast %1 : vector<1x4x128xf32> to vector<4x128xf32>
    %3 = arith.truncf %2 : vector<4x128xf32> to vector<4x128xbf16>
    %c0_2 = arith.constant 0 : index
    %c0_3 = arith.constant 0 : index
    %c0_4 = arith.constant 0 : index
    %4 = vector.load %arg2[%c0_2, %c0_3, %c0_4] : memref<5x128x128xbf16, #tpu.memory_space<vmem>>, vector<1x128x128xbf16>
    %5 = vector.shape_cast %4 : vector<1x128x128xbf16> to vector<128x128xbf16>
    %cst_5 = arith.constant dense<0.000000e+00> : vector<4x128xf32>
    %6 = tpu.matmul %3, %5, %cst_5 {dimension_numbers = #tpu.dot_dimension_numbers<[1], [0], [0], [1], [0, 0, 1, 1], [], []>} : vector<4x128xbf16>, vector<128x128xbf16>, vector<4x128xf32> -> vector<4x128xf32>
    %7 = arith.addf %0, %6 : vector<4x128xf32>
    %c0_6 = arith.constant 0 : index
    %c1 = arith.constant 1 : index
    %c0_7 = arith.constant 0 : index
    %8 = vector.load %arg1[%c0_6, %c1, %c0_7] : memref<1x8x128xf32, #tpu.memory_space<vmem>>, vector<1x4x128xf32>
    %9 = vector.shape_cast %8 : vector<1x4x128xf32> to vector<4x128xf32>
    %10 = arith.truncf %9 : vector<4x128xf32> to vector<4x128xbf16>
    %c1_8 = arith.constant 1 : index
    %c0_9 = arith.constant 0 : index
    %c0_10 = arith.constant 0 : index
    %11 = vector.load %arg2[%c1_8, %c0_9, %c0_10] : memref<5x128x128xbf16, #tpu.memory_space<vmem>>, vector<1x128x128xbf16>
    %12 = vector.shape_cast %11 : vector<1x128x128xbf16> to vector<128x128xbf16>
    %cst_11 = arith.constant dense<0.000000e+00> : vector<4x128xf32>
    %13 = tpu.matmul %10, %12, %cst_11 {dimension_numbers = #tpu.dot_dimension_numbers<[1], [0], [0], [1], [0, 0, 1, 1], [], []>} : vector<4x128xbf16>, vector<128x128xbf16>, vector<4x128xf32> -> vector<4x128xf32>
    %14 = arith.addf %7, %13 : vector<4x128xf32>
    %c0_12 = arith.constant 0 : index
    %c2 = arith.constant 2 : index
    %c0_13 = arith.constant 0 : index
    %15 = vector.load %arg1[%c0_12, %c2, %c0_13] : memref<1x8x128xf32, #tpu.memory_space<vmem>>, vector<1x4x128xf32>
    %16 = vector.shape_cast %15 : vector<1x4x128xf32> to vector<4x128xf32>
    %17 = arith.truncf %16 : vector<4x128xf32> to vector<4x128xbf16>
    %c2_14 = arith.constant 2 : index
    %c0_15 = arith.constant 0 : index
    %c0_16 = arith.constant 0 : index
    %18 = vector.load %arg2[%c2_14, %c0_15, %c0_16] : memref<5x128x128xbf16, #tpu.memory_space<vmem>>, vector<1x128x128xbf16>
    %19 = vector.shape_cast %18 : vector<1x128x128xbf16> to vector<128x128xbf16>
    %cst_17 = arith.constant dense<0.000000e+00> : vector<4x128xf32>
    %20 = tpu.matmul %17, %19, %cst_17 {dimension_numbers = #tpu.dot_dimension_numbers<[1], [0], [0], [1], [0, 0, 1, 1], [], []>} : vector<4x128xbf16>, vector<128x128xbf16>, vector<4x128xf32> -> vector<4x128xf32>
    %21 = arith.addf %14, %20 : vector<4x128xf32>
    %c0_18 = arith.constant 0 : index
    %c3 = arith.constant 3 : index
    %c0_19 = arith.constant 0 : index
    %22 = vector.load %arg1[%c0_18, %c3, %c0_19] : memref<1x8x128xf32, #tpu.memory_space<vmem>>, vector<1x4x128xf32>
    %23 = vector.shape_cast %22 : vector<1x4x128xf32> to vector<4x128xf32>
    %24 = arith.truncf %23 : vector<4x128xf32> to vector<4x128xbf16>
    %c3_20 = arith.constant 3 : index
    %c0_21 = arith.constant 0 : index
    %c0_22 = arith.constant 0 : index
    %25 = vector.load %arg2[%c3_20, %c0_21, %c0_22] : memref<5x128x128xbf16, #tpu.memory_space<vmem>>, vector<1x128x128xbf16>
    %26 = vector.shape_cast %25 : vector<1x128x128xbf16> to vector<128x128xbf16>
    %cst_23 = arith.constant dense<0.000000e+00> : vector<4x128xf32>
    %27 = tpu.matmul %24, %26, %cst_23 {dimension_numbers = #tpu.dot_dimension_numbers<[1], [0], [0], [1], [0, 0, 1, 1], [], []>} : vector<4x128xbf16>, vector<128x128xbf16>, vector<4x128xf32> -> vector<4x128xf32>
    %28 = arith.addf %21, %27 : vector<4x128xf32>
    %c0_24 = arith.constant 0 : index
    %c4 = arith.constant 4 : index
    %c0_25 = arith.constant 0 : index
    %29 = vector.load %arg1[%c0_24, %c4, %c0_25] : memref<1x8x128xf32, #tpu.memory_space<vmem>>, vector<1x4x128xf32>
    %30 = vector.shape_cast %29 : vector<1x4x128xf32> to vector<4x128xf32>
    %31 = arith.truncf %30 : vector<4x128xf32> to vector<4x128xbf16>
    %c4_26 = arith.constant 4 : index
    %c0_27 = arith.constant 0 : index
    %c0_28 = arith.constant 0 : index
    %32 = vector.load %arg2[%c4_26, %c0_27, %c0_28] : memref<5x128x128xbf16, #tpu.memory_space<vmem>>, vector<1x128x128xbf16>
    %33 = vector.shape_cast %32 : vector<1x128x128xbf16> to vector<128x128xbf16>
    %cst_29 = arith.constant dense<0.000000e+00> : vector<4x128xf32>
    %34 = tpu.matmul %31, %33, %cst_29 {dimension_numbers = #tpu.dot_dimension_numbers<[1], [0], [0], [1], [0, 0, 1, 1], [], []>} : vector<4x128xbf16>, vector<128x128xbf16>, vector<4x128xf32> -> vector<4x128xf32>
    %35 = arith.addf %28, %34 : vector<4x128xf32>
    %c0_30 = arith.constant 0 : index
    %c0_31 = arith.constant 0 : index
    %36 = vector.load %arg3[%c0_30, %c0_31] : memref<1x128xf32, #tpu.memory_space<vmem>>, vector<1x128xf32>
    %37 = vector.broadcast %36 : vector<1x128xf32> to vector<4x128xf32>
    %38 = arith.addf %35, %37 : vector<4x128xf32>
    %cst_32 = arith.constant 0.000000e+00 : f32
    %39 = vector.broadcast %cst_32 : f32 to vector<4x128xf32>
    %40 = arith.cmpf ogt, %38, %39 : vector<4x128xf32>
    %cst_33 = arith.constant 2.000000e-01 : f32
    %41 = vector.broadcast %cst_33 : f32 to vector<4x128xf32>
    %42 = arith.mulf %41, %38 : vector<4x128xf32>
    %43 = arith.select %40, %38, %42 : vector<4x128xi1>, vector<4x128xf32>
    %c0_34 = arith.constant 0 : index
    %c0_35 = arith.constant 0 : index
    %44 = vector.load %arg4[%c0_34, %c0_35] : memref<1x128xf32, #tpu.memory_space<vmem>>, vector<1x128xf32>
    %45 = vector.broadcast %44 : vector<1x128xf32> to vector<4x128xf32>
    %46 = arith.mulf %43, %45 : vector<4x128xf32>
    %c0_36 = arith.constant 0 : index
    %c0_37 = arith.constant 0 : index
    %47 = vector.load %arg5[%c0_36, %c0_37] : memref<1x128xf32, #tpu.memory_space<vmem>>, vector<1x128xf32>
    %48 = vector.broadcast %47 : vector<1x128xf32> to vector<4x128xf32>
    %49 = arith.addf %46, %48 : vector<4x128xf32>
    %c0_38 = arith.constant 0 : index
    %c0_39 = arith.constant 0 : index
    %c0_40 = arith.constant 0 : index
    %50 = vector.load %arg6[%c0_38, %c0_39, %c0_40] : memref<1x4x128xf32, #tpu.memory_space<vmem>>, vector<1x4x128xf32>
    %51 = vector.shape_cast %50 : vector<1x4x128xf32> to vector<4x128xf32>
    %52 = vector.shape_cast %49 : vector<4x128xf32> to vector<1x4x128xf32>
    tpu.vector_store %arg6[%c0_38, %c0_39, %c0_40], %52 {strides = array<i32>} : memref<1x4x128xf32, #tpu.memory_space<vmem>>, vector<1x4x128xf32>,
    return
  }
  func.func @transform_0(%arg0: i32) -> (i32, i32, i32) {
    %c0_i32 = arith.constant 0 : i32
    %c0_i32_0 = arith.constant 0 : i32
    %c0_i32_1 = arith.constant 0 : i32
    return %arg0, %c0_i32, %c0_i32_0 : i32, i32, i32
  }
  func.func @transform_1(%arg0: i32) -> (i32, i32, i32) {
    %c0_i32 = arith.constant 0 : i32
    %c0_i32_0 = arith.constant 0 : i32
    %c0_i32_1 = arith.constant 0 : i32
    %c0_i32_2 = arith.constant 0 : i32
    return %c0_i32, %c0_i32_0, %c0_i32_1 : i32, i32, i32
  }
  func.func @transform_2(%arg0: i32) -> (i32, i32) {
    %c0_i32 = arith.constant 0 : i32
    %c0_i32_0 = arith.constant 0 : i32
    %c0_i32_1 = arith.constant 0 : i32
    return %c0_i32, %c0_i32_0 : i32, i32
  }
  func.func @transform_3(%arg0: i32) -> (i32, i32) {
    %c0_i32 = arith.constant 0 : i32
    %c0_i32_0 = arith.constant 0 : i32
    %c0_i32_1 = arith.constant 0 : i32
    return %c0_i32, %c0_i32_0 : i32, i32
  }
  func.func @transform_4(%arg0: i32) -> (i32, i32) {
    %c0_i32 = arith.constant 0 : i32
    %c0_i32_0 = arith.constant 0 : i32
    %c0_i32_1 = arith.constant 0 : i32
    return %c0_i32, %c0_i32_0 : i32, i32
  }
  func.func @transform_5(%arg0: i32) -> (i32, i32, i32) {
    %c0_i32 = arith.constant 0 : i32
    %c0_i32_0 = arith.constant 0 : i32
    %c0_i32_1 = arith.constant 0 : i32
    return %arg0, %c0_i32, %c0_i32_0 : i32, i32, i32
  }
}

module attributes {stable_mosaic.version = 11 : i64} {
  func.func @_conv1d_kernel(%arg0: i32, %arg1: memref<1x12x128xf32, #tpu.memory_space<vmem>>, %arg2: memref<5x128x128xbf16, #tpu.memory_space<vmem>>, %arg3: memref<1x128xf32, #tpu.memory_space<vmem>>, %arg4: memref<1x128xf32, #tpu.memory_space<vmem>>, %arg5: memref<1x128xf32, #tpu.memory_space<vmem>>, %arg6: memref<1x8x128xf32, #tpu.memory_space<vmem>>) attributes {dimension_semantics = [#tpu.dimension_semantics<parallel>], iteration_bounds = array<i64: 2>, scalar_prefetch = 0 : i64, scratch_operands = 0 : i64, tpu.core_type = #tpu.core_type<tc>, window_params = [{transform_indices = @transform_0, window_bounds = array<i64: 1, 12, 128>}, {pipeline_mode = #tpu.pipeline_mode<synchronous>, transform_indices = @transform_1, window_bounds = array<i64: 5, 128, 128>}, {pipeline_mode = #tpu.pipeline_mode<synchronous>, transform_indices = @transform_2, window_bounds = array<i64: 1, 128>}, {pipeline_mode = #tpu.pipeline_mode<synchronous>, transform_indices = @transform_3, window_bounds = array<i64: 1, 128>}, {pipeline_mode = #tpu.pipeline_mode<synchronous>, transform_indices = @transform_4, window_bounds = array<i64: 1, 128>}, {transform_indices = @transform_5, window_bounds = array<i64: 1, 8, 128>}]} {
    %cst = arith.constant 0.000000e+00 : f32
    %0 = vector.broadcast %cst : f32 to vector<8x128xf32>
    %c0 = arith.constant 0 : index
    %c0_0 = arith.constant 0 : index
    %c0_1 = arith.constant 0 : index
    %1 = vector.load %arg1[%c0, %c0_0, %c0_1] : memref<1x12x128xf32, #tpu.memory_space<vmem>>, vector<1x8x128xf32>
    %2 = vector.shape_cast %1 : vector<1x8x128xf32> to vector<8x128xf32>
    %3 = arith.truncf %2 : vector<8x128xf32> to vector<8x128xbf16>
    %c0_2 = arith.constant 0 : index
    %c0_3 = arith.constant 0 : index
    %c0_4 = arith.constant 0 : index
    %4 = vector.load %arg2[%c0_2, %c0_3, %c0_4] : memref<5x128x128xbf16, #tpu.memory_space<vmem>>, vector<1x128x128xbf16>
    %5 = vector.shape_cast %4 : vector<1x128x128xbf16> to vector<128x128xbf16>
    %cst_5 = arith.constant dense<0.000000e+00> : vector<8x128xf32>
    %6 = tpu.matmul %3, %5, %cst_5 {dimension_numbers = #tpu.dot_dimension_numbers<[1], [0], [0], [1], [0, 0, 1, 1], [], []>} : vector<8x128xbf16>, vector<128x128xbf16>, vector<8x128xf32> -> vector<8x128xf32>
    %7 = arith.addf %0, %6 : vector<8x128xf32>
    %c0_6 = arith.constant 0 : index
    %c1 = arith.constant 1 : index
    %c0_7 = arith.constant 0 : index
    %8 = vector.load %arg1[%c0_6, %c1, %c0_7] : memref<1x12x128xf32, #tpu.memory_space<vmem>>, vector<1x8x128xf32>
    %9 = vector.shape_cast %8 : vector<1x8x128xf32> to vector<8x128xf32>
    %10 = arith.truncf %9 : vector<8x128xf32> to vector<8x128xbf16>
    %c1_8 = arith.constant 1 : index
    %c0_9 = arith.constant 0 : index
    %c0_10 = arith.constant 0 : index
    %11 = vector.load %arg2[%c1_8, %c0_9, %c0_10] : memref<5x128x128xbf16, #tpu.memory_space<vmem>>, vector<1x128x128xbf16>
    %12 = vector.shape_cast %11 : vector<1x128x128xbf16> to vector<128x128xbf16>
    %cst_11 = arith.constant dense<0.000000e+00> : vector<8x128xf32>
    %13 = tpu.matmul %10, %12, %cst_11 {dimension_numbers = #tpu.dot_dimension_numbers<[1], [0], [0], [1], [0, 0, 1, 1], [], []>} : vector<8x128xbf16>, vector<128x128xbf16>, vector<8x128xf32> -> vector<8x128xf32>
    %14 = arith.addf %7, %13 : vector<8x128xf32>
    %c0_12 = arith.constant 0 : index
    %c2 = arith.constant 2 : index
    %c0_13 = arith.constant 0 : index
    %15 = vector.load %arg1[%c0_12, %c2, %c0_13] : memref<1x12x128xf32, #tpu.memory_space<vmem>>, vector<1x8x128xf32>
    %16 = vector.shape_cast %15 : vector<1x8x128xf32> to vector<8x128xf32>
    %17 = arith.truncf %16 : vector<8x128xf32> to vector<8x128xbf16>
    %c2_14 = arith.constant 2 : index
    %c0_15 = arith.constant 0 : index
    %c0_16 = arith.constant 0 : index
    %18 = vector.load %arg2[%c2_14, %c0_15, %c0_16] : memref<5x128x128xbf16, #tpu.memory_space<vmem>>, vector<1x128x128xbf16>
    %19 = vector.shape_cast %18 : vector<1x128x128xbf16> to vector<128x128xbf16>
    %cst_17 = arith.constant dense<0.000000e+00> : vector<8x128xf32>
    %20 = tpu.matmul %17, %19, %cst_17 {dimension_numbers = #tpu.dot_dimension_numbers<[1], [0], [0], [1], [0, 0, 1, 1], [], []>} : vector<8x128xbf16>, vector<128x128xbf16>, vector<8x128xf32> -> vector<8x128xf32>
    %21 = arith.addf %14, %20 : vector<8x128xf32>
    %c0_18 = arith.constant 0 : index
    %c3 = arith.constant 3 : index
    %c0_19 = arith.constant 0 : index
    %22 = vector.load %arg1[%c0_18, %c3, %c0_19] : memref<1x12x128xf32, #tpu.memory_space<vmem>>, vector<1x8x128xf32>
    %23 = vector.shape_cast %22 : vector<1x8x128xf32> to vector<8x128xf32>
    %24 = arith.truncf %23 : vector<8x128xf32> to vector<8x128xbf16>
    %c3_20 = arith.constant 3 : index
    %c0_21 = arith.constant 0 : index
    %c0_22 = arith.constant 0 : index
    %25 = vector.load %arg2[%c3_20, %c0_21, %c0_22] : memref<5x128x128xbf16, #tpu.memory_space<vmem>>, vector<1x128x128xbf16>
    %26 = vector.shape_cast %25 : vector<1x128x128xbf16> to vector<128x128xbf16>
    %cst_23 = arith.constant dense<0.000000e+00> : vector<8x128xf32>
    %27 = tpu.matmul %24, %26, %cst_23 {dimension_numbers = #tpu.dot_dimension_numbers<[1], [0], [0], [1], [0, 0, 1, 1], [], []>} : vector<8x128xbf16>, vector<128x128xbf16>, vector<8x128xf32> -> vector<8x128xf32>
    %28 = arith.addf %21, %27 : vector<8x128xf32>
    %c0_24 = arith.constant 0 : index
    %c4 = arith.constant 4 : index
    %c0_25 = arith.constant 0 : index
    %29 = vector.load %arg1[%c0_24, %c4, %c0_25] : memref<1x12x128xf32, #tpu.memory_space<vmem>>, vector<1x8x128xf32>
    %30 = vector.shape_cast %29 : vector<1x8x128xf32> to vector<8x128xf32>
    %31 = arith.truncf %30 : vector<8x128xf32> to vector<8x128xbf16>
    %c4_26 = arith.constant 4 : index
    %c0_27 = arith.constant 0 : index
    %c0_28 = arith.constant 0 : index
    %32 = vector.load %arg2[%c4_26, %c0_27, %c0_28] : memref<5x128x128xbf16, #tpu.memory_space<vmem>>, vector<1x128x128xbf16>
    %33 = vector.shape_cast %32 : vector<1x128x128xbf16> to vector<128x128xbf16>
    %cst_29 = arith.constant dense<0.000000e+00> : vector<8x128xf32>
    %34 = tpu.matmul %31, %33, %cst_29 {dimension_numbers = #tpu.dot_dimension_numbers<[1], [0], [0], [1], [0, 0, 1, 1], [], []>} : vector<8x128xbf16>, vector<128x128xbf16>, vector<8x128xf32> -> vector<8x128xf32>
    %35 = arith.addf %28, %34 : vector<8x128xf32>
    %c0_30 = arith.constant 0 : index
    %c0_31 = arith.constant 0 : index
    %36 = vector.load %arg3[%c0_30, %c0_31] : memref<1x128xf32, #tpu.memory_space<vmem>>, vector<1x128xf32>
    %37 = vector.broadcast %36 : vector<1x128xf32> to vector<8x128xf32>
    %38 = arith.addf %35, %37 : vector<8x128xf32>
    %c0_32 = arith.constant 0 : index
    %c0_33 = arith.constant 0 : index
    %c0_34 = arith.constant 0 : index
    %39 = vector.load %arg6[%c0_32, %c0_33, %c0_34] : memref<1x8x128xf32, #tpu.memory_space<vmem>>, vector<1x8x128xf32>
    %40 = vector.shape_cast %39 : vector<1x8x128xf32> to vector<8x128xf32>
    %41 = vector.shape_cast %38 : vector<8x128xf32> to vector<1x8x128xf32>
    tpu.vector_store %arg6[%c0_32, %c0_33, %c0_34], %41 {strides = array<i32>} : memref<1x8x128xf32, #tpu.memory_space<vmem>>, vector<1x8x128xf32>,
    return
  }
  func.func @transform_0(%arg0: i32) -> (i32, i32, i32) {
    %c0_i32 = arith.constant 0 : i32
    %c0_i32_0 = arith.constant 0 : i32
    %c0_i32_1 = arith.constant 0 : i32
    return %arg0, %c0_i32, %c0_i32_0 : i32, i32, i32
  }
  func.func @transform_1(%arg0: i32) -> (i32, i32, i32) {
    %c0_i32 = arith.constant 0 : i32
    %c0_i32_0 = arith.constant 0 : i32
    %c0_i32_1 = arith.constant 0 : i32
    %c0_i32_2 = arith.constant 0 : i32
    return %c0_i32, %c0_i32_0, %c0_i32_1 : i32, i32, i32
  }
  func.func @transform_2(%arg0: i32) -> (i32, i32) {
    %c0_i32 = arith.constant 0 : i32
    %c0_i32_0 = arith.constant 0 : i32
    %c0_i32_1 = arith.constant 0 : i32
    return %c0_i32, %c0_i32_0 : i32, i32
  }
  func.func @transform_3(%arg0: i32) -> (i32, i32) {
    %c0_i32 = arith.constant 0 : i32
    %c0_i32_0 = arith.constant 0 : i32
    %c0_i32_1 = arith.constant 0 : i32
    return %c0_i32, %c0_i32_0 : i32, i32
  }
  func.func @transform_4(%arg0: i32) -> (i32, i32) {
    %c0_i32 = arith.constant 0 : i32
    %c0_i32_0 = arith.constant 0 : i32
    %c0_i32_1 = arith.constant 0 : i32
    return %c0_i32, %c0_i32_0 : i32, i32
  }
  func.func @transform_5(%arg0: i32) -> (i32, i32, i32) {
    %c0_i32 = arith.constant 0 : i32
    %c0_i32_0 = arith.constant 0 : i32
    %c0_i32_1 = arith.constant 0 : i32
    return %arg0, %c0_i32, %c0_i32_0 : i32, i32, i32
  }
}

module attributes {stable_mosaic.version = 11 : i64} {
  func.func @_tlayer_kernel(%arg0: i32, %arg1: memref<1x8x128xf32, #tpu.memory_space<vmem>>, %arg2: memref<128x384xbf16, #tpu.memory_space<vmem>>, %arg3: memref<1x384xf32, #tpu.memory_space<vmem>>, %arg4: memref<128x128xbf16, #tpu.memory_space<vmem>>, %arg5: memref<1x128xf32, #tpu.memory_space<vmem>>, %arg6: memref<1x128xf32, #tpu.memory_space<vmem>>, %arg7: memref<1x128xf32, #tpu.memory_space<vmem>>, %arg8: memref<128x128xbf16, #tpu.memory_space<vmem>>, %arg9: memref<1x128xf32, #tpu.memory_space<vmem>>, %arg10: memref<128x128xbf16, #tpu.memory_space<vmem>>, %arg11: memref<1x128xf32, #tpu.memory_space<vmem>>, %arg12: memref<1x128xf32, #tpu.memory_space<vmem>>, %arg13: memref<1x128xf32, #tpu.memory_space<vmem>>, %arg14: memref<1x8x128xf32, #tpu.memory_space<vmem>>) attributes {dimension_semantics = [#tpu.dimension_semantics<parallel>], iteration_bounds = array<i64: 2>, scalar_prefetch = 0 : i64, scratch_operands = 0 : i64, tpu.core_type = #tpu.core_type<tc>, window_params = [{transform_indices = @transform_0, window_bounds = array<i64: 1, 8, 128>}, {pipeline_mode = #tpu.pipeline_mode<synchronous>, transform_indices = @transform_1, window_bounds = array<i64: 128, 384>}, {pipeline_mode = #tpu.pipeline_mode<synchronous>, transform_indices = @transform_2, window_bounds = array<i64: 1, 384>}, {pipeline_mode = #tpu.pipeline_mode<synchronous>, transform_indices = @transform_3, window_bounds = array<i64: 128, 128>}, {pipeline_mode = #tpu.pipeline_mode<synchronous>, transform_indices = @transform_4, window_bounds = array<i64: 1, 128>}, {pipeline_mode = #tpu.pipeline_mode<synchronous>, transform_indices = @transform_5, window_bounds = array<i64: 1, 128>}, {pipeline_mode = #tpu.pipeline_mode<synchronous>, transform_indices = @transform_6, window_bounds = array<i64: 1, 128>}, {pipeline_mode = #tpu.pipeline_mode<synchronous>, transform_indices = @transform_7, window_bounds = array<i64: 128, 128>}, {pipeline_mode = #tpu.pipeline_mode<synchronous>, transform_indices = @transform_8, window_bounds = array<i64: 1, 128>}, {pipeline_mode = #tpu.pipeline_mode<synchronous>, transform_indices = @transform_9, window_bounds = array<i64: 128, 128>}, {pipeline_mode = #tpu.pipeline_mode<synchronous>, transform_indices = @transform_10, window_bounds = array<i64: 1, 128>}, {pipeline_mode = #tpu.pipeline_mode<synchronous>, transform_indices = @transform_11, window_bounds = array<i64: 1, 128>}, {pipeline_mode = #tpu.pipeline_mode<synchronous>, transform_indices = @transform_12, window_bounds = array<i64: 1, 128>}, {transform_indices = @transform_13, window_bounds = array<i64: 1, 8, 128>}]} {
    %c0 = arith.constant 0 : index
    %c0_0 = arith.constant 0 : index
    %c0_1 = arith.constant 0 : index
    %0 = vector.load %arg1[%c0, %c0_0, %c0_1] : memref<1x8x128xf32, #tpu.memory_space<vmem>>, vector<1x8x128xf32>
    %1 = vector.shape_cast %0 : vector<1x8x128xf32> to vector<8x128xf32>
    %2 = arith.truncf %1 : vector<8x128xf32> to vector<8x128xbf16>
    %c0_2 = arith.constant 0 : index
    %c0_3 = arith.constant 0 : index
    %3 = vector.load %arg2[%c0_2, %c0_3] : memref<128x384xbf16, #tpu.memory_space<vmem>>, vector<128x384xbf16>
    %cst = arith.constant dense<0.000000e+00> : vector<8x384xf32>
    %4 = tpu.matmul %2, %3, %cst {dimension_numbers = #tpu.dot_dimension_numbers<[1], [0], [0], [1], [0, 0, 1, 1], [], []>} : vector<8x128xbf16>, vector<128x384xbf16>, vector<8x384xf32> -> vector<8x384xf32>
    %c0_4 = arith.constant 0 : index
    %c0_5 = arith.constant 0 : index
    %5 = vector.load %arg3[%c0_4, %c0_5] : memref<1x384xf32, #tpu.memory_space<vmem>>, vector<1x384xf32>
    %6 = vector.broadcast %5 : vector<1x384xf32> to vector<8x384xf32>
    %7 = arith.addf %4, %6 : vector<8x384xf32>
    %8 = vector.extract_strided_slice %7 {offsets = [0, 0], sizes = [8, 128], strides = [1, 1]} : vector<8x384xf32> to vector<8x128xf32>
    %9 = vector.extract_strided_slice %7 {offsets = [0, 128], sizes = [8, 128], strides = [1, 1]} : vector<8x384xf32> to vector<8x128xf32>
    %10 = vector.extract_strided_slice %7 {offsets = [0, 256], sizes = [8, 128], strides = [1, 1]} : vector<8x384xf32> to vector<8x128xf32>
    %11 = arith.truncf %9 : vector<8x128xf32> to vector<8x128xbf16>
    %12 = tpu.iota {dimensions = array<i32: 1>} : vector<1x128xi32>
    %cst_6 = arith.constant 0.000000e+00 : f32
    %13 = vector.broadcast %cst_6 : f32 to vector<8x128xf32>
    %c0_i32 = arith.constant 0 : i32
    %14 = vector.broadcast %c0_i32 : i32 to vector<1x128xi32>
    %15 = arith.cmpi sge, %12, %14 : vector<1x128xi32>
    %c8_i32 = arith.constant 8 : i32
    %16 = vector.broadcast %c8_i32 : i32 to vector<1x128xi32>
    %17 = arith.cmpi slt, %12, %16 : vector<1x128xi32>
    %18 = arith.andi %15, %17 : vector<1x128xi1>
    %cst_7 = arith.constant 0.000000e+00 : f32
    %19 = vector.shape_cast %18 : vector<1x128xi1> to vector<1x128xi1>
    %20 = vector.broadcast %19 : vector<1x128xi1> to vector<8x128xi1>
    %21 = vector.broadcast %cst_7 : f32 to vector<8x128xf32>
    %22 = arith.select %20, %8, %21 : vector<8x128xi1>, vector<8x128xf32>
    %23 = arith.truncf %22 : vector<8x128xf32> to vector<8x128xbf16>
    %cst_8 = arith.constant dense<0.000000e+00> : vector<8x8xf32>
    %24 = tpu.matmul %23, %11, %cst_8 {dimension_numbers = #tpu.dot_dimension_numbers<[1], [1], [0], [0], [0, 0, 1, 0], [], []>} : vector<8x128xbf16>, vector<8x128xbf16>, vector<8x8xf32> -> vector<8x8xf32>
    %cst_9 = arith.constant 0.353553385 : f32
    %25 = vector.broadcast %cst_9 : f32 to vector<8x8xf32>
    %26 = arith.mulf %24, %25 : vector<8x8xf32>
    %cst_10 = arith.constant dense<0xFF800000> : vector<8xf32>
    %27 = vector.multi_reduction <maximumf>, %26, %cst_10 [1] : vector<8x8xf32> to vector<8xf32>
    %28 = vector.shape_cast %27 : vector<8xf32> to vector<8x1xf32>
    %29 = vector.broadcast %28 : vector<8x1xf32> to vector<8x8xf32>
    %30 = arith.subf %26, %29 : vector<8x8xf32>
    %31 = math.exp %30 : vector<8x8xf32>
    %cst_11 = arith.constant dense<0.000000e+00> : vector<8xf32>
    %32 = vector.multi_reduction <add>, %31, %cst_11 [1] : vector<8x8xf32> to vector<8xf32>
    %33 = vector.shape_cast %32 : vector<8xf32> to vector<8x1xf32>
    %34 = tpu.reciprocal %33 {approx = true} : vector<8x1xf32> -> vector<8x1xf32>
    %35 = vector.broadcast %34 : vector<8x1xf32> to vector<8x8xf32>
    %36 = arith.mulf %31, %35 : vector<8x8xf32>
    %cst_12 = arith.constant 0.000000e+00 : f32
    %37 = vector.shape_cast %18 : vector<1x128xi1> to vector<1x128xi1>
    %38 = vector.broadcast %37 : vector<1x128xi1> to vector<8x128xi1>
    %39 = vector.broadcast %cst_12 : f32 to vector<8x128xf32>
    %40 = arith.select %38, %10, %39 : vector<8x128xi1>, vector<8x128xf32>
    %41 = arith.truncf %40 : vector<8x128xf32> to vector<8x128xbf16>
    %42 = arith.truncf %36 : vector<8x8xf32> to vector<8x8xbf16>
    %cst_13 = arith.constant dense<0.000000e+00> : vector<8x128xf32>
    %43 = tpu.matmul %42, %41, %cst_13 {dimension_numbers = #tpu.dot_dimension_numbers<[1], [0], [0], [1], [0, 0, 1, 1], [], []>} : vector<8x8xbf16>, vector<8x128xbf16>, vector<8x128xf32> -> vector<8x128xf32>
    %44 = arith.addf %13, %43 : vector<8x128xf32>
    %c8_i32_14 = arith.constant 8 : i32
    %45 = vector.broadcast %c8_i32_14 : i32 to vector<1x128xi32>
    %46 = arith.cmpi sge, %12, %45 : vector<1x128xi32>
    %c16_i32 = arith.constant 16 : i32
    %47 = vector.broadcast %c16_i32 : i32 to vector<1x128xi32>
    %48 = arith.cmpi slt, %12, %47 : vector<1x128xi32>
    %49 = arith.andi %46, %48 : vector<1x128xi1>
    %cst_15 = arith.constant 0.000000e+00 : f32
    %50 = vector.shape_cast %49 : vector<1x128xi1> to vector<1x128xi1>
    %51 = vector.broadcast %50 : vector<1x128xi1> to vector<8x128xi1>
    %52 = vector.broadcast %cst_15 : f32 to vector<8x128xf32>
    %53 = arith.select %51, %8, %52 : vector<8x128xi1>, vector<8x128xf32>
    %54 = arith.truncf %53 : vector<8x128xf32> to vector<8x128xbf16>
    %cst_16 = arith.constant dense<0.000000e+00> : vector<8x8xf32>
    %55 = tpu.matmul %54, %11, %cst_16 {dimension_numbers = #tpu.dot_dimension_numbers<[1], [1], [0], [0], [0, 0, 1, 0], [], []>} : vector<8x128xbf16>, vector<8x128xbf16>, vector<8x8xf32> -> vector<8x8xf32>
    %cst_17 = arith.constant 0.353553385 : f32
    %56 = vector.broadcast %cst_17 : f32 to vector<8x8xf32>
    %57 = arith.mulf %55, %56 : vector<8x8xf32>
    %cst_18 = arith.constant dense<0xFF800000> : vector<8xf32>
    %58 = vector.multi_reduction <maximumf>, %57, %cst_18 [1] : vector<8x8xf32> to vector<8xf32>
    %59 = vector.shape_cast %58 : vector<8xf32> to vector<8x1xf32>
    %60 = vector.broadcast %59 : vector<8x1xf32> to vector<8x8xf32>
    %61 = arith.subf %57, %60 : vector<8x8xf32>
    %62 = math.exp %61 : vector<8x8xf32>
    %cst_19 = arith.constant dense<0.000000e+00> : vector<8xf32>
    %63 = vector.multi_reduction <add>, %62, %cst_19 [1] : vector<8x8xf32> to vector<8xf32>
    %64 = vector.shape_cast %63 : vector<8xf32> to vector<8x1xf32>
    %65 = tpu.reciprocal %64 {approx = true} : vector<8x1xf32> -> vector<8x1xf32>
    %66 = vector.broadcast %65 : vector<8x1xf32> to vector<8x8xf32>
    %67 = arith.mulf %62, %66 : vector<8x8xf32>
    %cst_20 = arith.constant 0.000000e+00 : f32
    %68 = vector.shape_cast %49 : vector<1x128xi1> to vector<1x128xi1>
    %69 = vector.broadcast %68 : vector<1x128xi1> to vector<8x128xi1>
    %70 = vector.broadcast %cst_20 : f32 to vector<8x128xf32>
    %71 = arith.select %69, %10, %70 : vector<8x128xi1>, vector<8x128xf32>
    %72 = arith.truncf %71 : vector<8x128xf32> to vector<8x128xbf16>
    %73 = arith.truncf %67 : vector<8x8xf32> to vector<8x8xbf16>
    %cst_21 = arith.constant dense<0.000000e+00> : vector<8x128xf32>
    %74 = tpu.matmul %73, %72, %cst_21 {dimension_numbers = #tpu.dot_dimension_numbers<[1], [0], [0], [1], [0, 0, 1, 1], [], []>} : vector<8x8xbf16>, vector<8x128xbf16>, vector<8x128xf32> -> vector<8x128xf32>
    %75 = arith.addf %44, %74 : vector<8x128xf32>
    %c16_i32_22 = arith.constant 16 : i32
    %76 = vector.broadcast %c16_i32_22 : i32 to vector<1x128xi32>
    %77 = arith.cmpi sge, %12, %76 : vector<1x128xi32>
    %c24_i32 = arith.constant 24 : i32
    %78 = vector.broadcast %c24_i32 : i32 to vector<1x128xi32>
    %79 = arith.cmpi slt, %12, %78 : vector<1x128xi32>
    %80 = arith.andi %77, %79 : vector<1x128xi1>
    %cst_23 = arith.constant 0.000000e+00 : f32
    %81 = vector.shape_cast %80 : vector<1x128xi1> to vector<1x128xi1>
    %82 = vector.broadcast %81 : vector<1x128xi1> to vector<8x128xi1>
    %83 = vector.broadcast %cst_23 : f32 to vector<8x128xf32>
    %84 = arith.select %82, %8, %83 : vector<8x128xi1>, vector<8x128xf32>
    %85 = arith.truncf %84 : vector<8x128xf32> to vector<8x128xbf16>
    %cst_24 = arith.constant dense<0.000000e+00> : vector<8x8xf32>
    %86 = tpu.matmul %85, %11, %cst_24 {dimension_numbers = #tpu.dot_dimension_numbers<[1], [1], [0], [0], [0, 0, 1, 0], [], []>} : vector<8x128xbf16>, vector<8x128xbf16>, vector<8x8xf32> -> vector<8x8xf32>
    %cst_25 = arith.constant 0.353553385 : f32
    %87 = vector.broadcast %cst_25 : f32 to vector<8x8xf32>
    %88 = arith.mulf %86, %87 : vector<8x8xf32>
    %cst_26 = arith.constant dense<0xFF800000> : vector<8xf32>
    %89 = vector.multi_reduction <maximumf>, %88, %cst_26 [1] : vector<8x8xf32> to vector<8xf32>
    %90 = vector.shape_cast %89 : vector<8xf32> to vector<8x1xf32>
    %91 = vector.broadcast %90 : vector<8x1xf32> to vector<8x8xf32>
    %92 = arith.subf %88, %91 : vector<8x8xf32>
    %93 = math.exp %92 : vector<8x8xf32>
    %cst_27 = arith.constant dense<0.000000e+00> : vector<8xf32>
    %94 = vector.multi_reduction <add>, %93, %cst_27 [1] : vector<8x8xf32> to vector<8xf32>
    %95 = vector.shape_cast %94 : vector<8xf32> to vector<8x1xf32>
    %96 = tpu.reciprocal %95 {approx = true} : vector<8x1xf32> -> vector<8x1xf32>
    %97 = vector.broadcast %96 : vector<8x1xf32> to vector<8x8xf32>
    %98 = arith.mulf %93, %97 : vector<8x8xf32>
    %cst_28 = arith.constant 0.000000e+00 : f32
    %99 = vector.shape_cast %80 : vector<1x128xi1> to vector<1x128xi1>
    %100 = vector.broadcast %99 : vector<1x128xi1> to vector<8x128xi1>
    %101 = vector.broadcast %cst_28 : f32 to vector<8x128xf32>
    %102 = arith.select %100, %10, %101 : vector<8x128xi1>, vector<8x128xf32>
    %103 = arith.truncf %102 : vector<8x128xf32> to vector<8x128xbf16>
    %104 = arith.truncf %98 : vector<8x8xf32> to vector<8x8xbf16>
    %cst_29 = arith.constant dense<0.000000e+00> : vector<8x128xf32>
    %105 = tpu.matmul %104, %103, %cst_29 {dimension_numbers = #tpu.dot_dimension_numbers<[1], [0], [0], [1], [0, 0, 1, 1], [], []>} : vector<8x8xbf16>, vector<8x128xbf16>, vector<8x128xf32> -> vector<8x128xf32>
    %106 = arith.addf %75, %105 : vector<8x128xf32>
    %c24_i32_30 = arith.constant 24 : i32
    %107 = vector.broadcast %c24_i32_30 : i32 to vector<1x128xi32>
    %108 = arith.cmpi sge, %12, %107 : vector<1x128xi32>
    %c32_i32 = arith.constant 32 : i32
    %109 = vector.broadcast %c32_i32 : i32 to vector<1x128xi32>
    %110 = arith.cmpi slt, %12, %109 : vector<1x128xi32>
    %111 = arith.andi %108, %110 : vector<1x128xi1>
    %cst_31 = arith.constant 0.000000e+00 : f32
    %112 = vector.shape_cast %111 : vector<1x128xi1> to vector<1x128xi1>
    %113 = vector.broadcast %112 : vector<1x128xi1> to vector<8x128xi1>
    %114 = vector.broadcast %cst_31 : f32 to vector<8x128xf32>
    %115 = arith.select %113, %8, %114 : vector<8x128xi1>, vector<8x128xf32>
    %116 = arith.truncf %115 : vector<8x128xf32> to vector<8x128xbf16>
    %cst_32 = arith.constant dense<0.000000e+00> : vector<8x8xf32>
    %117 = tpu.matmul %116, %11, %cst_32 {dimension_numbers = #tpu.dot_dimension_numbers<[1], [1], [0], [0], [0, 0, 1, 0], [], []>} : vector<8x128xbf16>, vector<8x128xbf16>, vector<8x8xf32> -> vector<8x8xf32>
    %cst_33 = arith.constant 0.353553385 : f32
    %118 = vector.broadcast %cst_33 : f32 to vector<8x8xf32>
    %119 = arith.mulf %117, %118 : vector<8x8xf32>
    %cst_34 = arith.constant dense<0xFF800000> : vector<8xf32>
    %120 = vector.multi_reduction <maximumf>, %119, %cst_34 [1] : vector<8x8xf32> to vector<8xf32>
    %121 = vector.shape_cast %120 : vector<8xf32> to vector<8x1xf32>
    %122 = vector.broadcast %121 : vector<8x1xf32> to vector<8x8xf32>
    %123 = arith.subf %119, %122 : vector<8x8xf32>
    %124 = math.exp %123 : vector<8x8xf32>
    %cst_35 = arith.constant dense<0.000000e+00> : vector<8xf32>
    %125 = vector.multi_reduction <add>, %124, %cst_35 [1] : vector<8x8xf32> to vector<8xf32>
    %126 = vector.shape_cast %125 : vector<8xf32> to vector<8x1xf32>
    %127 = tpu.reciprocal %126 {approx = true} : vector<8x1xf32> -> vector<8x1xf32>
    %128 = vector.broadcast %127 : vector<8x1xf32> to vector<8x8xf32>
    %129 = arith.mulf %124, %128 : vector<8x8xf32>
    %cst_36 = arith.constant 0.000000e+00 : f32
    %130 = vector.shape_cast %111 : vector<1x128xi1> to vector<1x128xi1>
    %131 = vector.broadcast %130 : vector<1x128xi1> to vector<8x128xi1>
    %132 = vector.broadcast %cst_36 : f32 to vector<8x128xf32>
    %133 = arith.select %131, %10, %132 : vector<8x128xi1>, vector<8x128xf32>
    %134 = arith.truncf %133 : vector<8x128xf32> to vector<8x128xbf16>
    %135 = arith.truncf %129 : vector<8x8xf32> to vector<8x8xbf16>
    %cst_37 = arith.constant dense<0.000000e+00> : vector<8x128xf32>
    %136 = tpu.matmul %135, %134, %cst_37 {dimension_numbers = #tpu.dot_dimension_numbers<[1], [0], [0], [1], [0, 0, 1, 1], [], []>} : vector<8x8xbf16>, vector<8x128xbf16>, vector<8x128xf32> -> vector<8x128xf32>
    %137 = arith.addf %106, %136 : vector<8x128xf32>
    %138 = arith.truncf %137 : vector<8x128xf32> to vector<8x128xbf16>
    %c0_38 = arith.constant 0 : index
    %c0_39 = arith.constant 0 : index
    %139 = vector.load %arg4[%c0_38, %c0_39] : memref<128x128xbf16, #tpu.memory_space<vmem>>, vector<128x128xbf16>
    %cst_40 = arith.constant dense<0.000000e+00> : vector<8x128xf32>
    %140 = tpu.matmul %138, %139, %cst_40 {dimension_numbers = #tpu.dot_dimension_numbers<[1], [0], [0], [1], [0, 0, 1, 1], [], []>} : vector<8x128xbf16>, vector<128x128xbf16>, vector<8x128xf32> -> vector<8x128xf32>
    %c0_41 = arith.constant 0 : index
    %c0_42 = arith.constant 0 : index
    %141 = vector.load %arg5[%c0_41, %c0_42] : memref<1x128xf32, #tpu.memory_space<vmem>>, vector<1x128xf32>
    %142 = vector.broadcast %141 : vector<1x128xf32> to vector<8x128xf32>
    %143 = arith.addf %140, %142 : vector<8x128xf32>
    %144 = arith.addf %1, %143 : vector<8x128xf32>
    %c0_43 = arith.constant 0 : index
    %c0_44 = arith.constant 0 : index
    %145 = vector.load %arg6[%c0_43, %c0_44] : memref<1x128xf32, #tpu.memory_space<vmem>>, vector<1x128xf32>
    %c0_45 = arith.constant 0 : index
    %c0_46 = arith.constant 0 : index
    %146 = vector.load %arg7[%c0_45, %c0_46] : memref<1x128xf32, #tpu.memory_space<vmem>>, vector<1x128xf32>
    %cst_47 = arith.constant dense<0.000000e+00> : vector<8xf32>
    %147 = vector.multi_reduction <add>, %144, %cst_47 [1] : vector<8x128xf32> to vector<8xf32>
    %148 = vector.shape_cast %147 : vector<8xf32> to vector<8x1xf32>
    %cst_48 = arith.constant 3.125000e-02 : f32
    %149 = vector.broadcast %cst_48 : f32 to vector<8x1xf32>
    %150 = arith.mulf %148, %149 : vector<8x1xf32>
    %151 = arith.mulf %144, %144 : vector<8x128xf32>
    %cst_49 = arith.constant dense<0.000000e+00> : vector<8xf32>
    %152 = vector.multi_reduction <add>, %151, %cst_49 [1] : vector<8x128xf32> to vector<8xf32>
    %153 = vector.shape_cast %152 : vector<8xf32> to vector<8x1xf32>
    %cst_50 = arith.constant 3.125000e-02 : f32
    %154 = vector.broadcast %cst_50 : f32 to vector<8x1xf32>
    %155 = arith.mulf %153, %154 : vector<8x1xf32>
    %156 = arith.mulf %150, %150 : vector<8x1xf32>
    %157 = arith.subf %155, %156 : vector<8x1xf32>
    %cst_51 = arith.constant 9.99999974E-6 : f32
    %158 = vector.broadcast %cst_51 : f32 to vector<8x1xf32>
    %159 = arith.addf %157, %158 : vector<8x1xf32>
    %160 = math.rsqrt %159 : vector<8x1xf32>
    %161 = vector.broadcast %150 : vector<8x1xf32> to vector<8x128xf32>
    %162 = arith.subf %144, %161 : vector<8x128xf32>
    %163 = vector.broadcast %160 : vector<8x1xf32> to vector<8x128xf32>
    %164 = arith.mulf %162, %163 : vector<8x128xf32>
    %165 = vector.broadcast %145 : vector<1x128xf32> to vector<8x128xf32>
    %166 = arith.mulf %164, %165 : vector<8x128xf32>
    %167 = vector.broadcast %146 : vector<1x128xf32> to vector<8x128xf32>
    %168 = arith.addf %166, %167 : vector<8x128xf32>
    %169 = arith.truncf %168 : vector<8x128xf32> to vector<8x128xbf16>
    %c0_52 = arith.constant 0 : index
    %c0_53 = arith.constant 0 : index
    %170 = vector.load %arg8[%c0_52, %c0_53] : memref<128x128xbf16, #tpu.memory_space<vmem>>, vector<128x128xbf16>
    %cst_54 = arith.constant dense<0.000000e+00> : vector<8x128xf32>
    %171 = tpu.matmul %169, %170, %cst_54 {dimension_numbers = #tpu.dot_dimension_numbers<[1], [0], [0], [1], [0, 0, 1, 1], [], []>} : vector<8x128xbf16>, vector<128x128xbf16>, vector<8x128xf32> -> vector<8x128xf32>
    %c0_55 = arith.constant 0 : index
    %c0_56 = arith.constant 0 : index
    %172 = vector.load %arg9[%c0_55, %c0_56] : memref<1x128xf32, #tpu.memory_space<vmem>>, vector<1x128xf32>
    %173 = vector.broadcast %172 : vector<1x128xf32> to vector<8x128xf32>
    %174 = arith.addf %171, %173 : vector<8x128xf32>
    %cst_57 = arith.constant 5.000000e-01 : f32
    %175 = vector.broadcast %cst_57 : f32 to vector<8x128xf32>
    %176 = arith.mulf %175, %174 : vector<8x128xf32>
    %cst_58 = arith.constant 4.471500e-02 : f32
    %177 = vector.broadcast %cst_58 : f32 to vector<8x128xf32>
    %178 = arith.mulf %177, %174 : vector<8x128xf32>
    %179 = arith.mulf %178, %174 : vector<8x128xf32>
    %180 = arith.mulf %179, %174 : vector<8x128xf32>
    %181 = arith.addf %174, %180 : vector<8x128xf32>
    %cst_59 = arith.constant 0.797884583 : f32
    %182 = vector.broadcast %cst_59 : f32 to vector<8x128xf32>
    %183 = arith.mulf %182, %181 : vector<8x128xf32>
    %184 = math.tanh %183 : vector<8x128xf32>
    %cst_60 = arith.constant 1.000000e+00 : f32
    %185 = vector.broadcast %cst_60 : f32 to vector<8x128xf32>
    %186 = arith.addf %185, %184 : vector<8x128xf32>
    %187 = arith.mulf %176, %186 : vector<8x128xf32>
    %188 = arith.truncf %187 : vector<8x128xf32> to vector<8x128xbf16>
    %c0_61 = arith.constant 0 : index
    %c0_62 = arith.constant 0 : index
    %189 = vector.load %arg10[%c0_61, %c0_62] : memref<128x128xbf16, #tpu.memory_space<vmem>>, vector<128x128xbf16>
    %cst_63 = arith.constant dense<0.000000e+00> : vector<8x128xf32>
    %190 = tpu.matmul %188, %189, %cst_63 {dimension_numbers = #tpu.dot_dimension_numbers<[1], [0], [0], [1], [0, 0, 1, 1], [], []>} : vector<8x128xbf16>, vector<128x128xbf16>, vector<8x128xf32> -> vector<8x128xf32>
    %c0_64 = arith.constant 0 : index
    %c0_65 = arith.constant 0 : index
    %191 = vector.load %arg11[%c0_64, %c0_65] : memref<1x128xf32, #tpu.memory_space<vmem>>, vector<1x128xf32>
    %192 = vector.broadcast %191 : vector<1x128xf32> to vector<8x128xf32>
    %193 = arith.addf %190, %192 : vector<8x128xf32>
    %194 = arith.addf %168, %193 : vector<8x128xf32>
    %c0_66 = arith.constant 0 : index
    %c0_67 = arith.constant 0 : index
    %195 = vector.load %arg12[%c0_66, %c0_67] : memref<1x128xf32, #tpu.memory_space<vmem>>, vector<1x128xf32>
    %c0_68 = arith.constant 0 : index
    %c0_69 = arith.constant 0 : index
    %196 = vector.load %arg13[%c0_68, %c0_69] : memref<1x128xf32, #tpu.memory_space<vmem>>, vector<1x128xf32>
    %cst_70 = arith.constant dense<0.000000e+00> : vector<8xf32>
    %197 = vector.multi_reduction <add>, %194, %cst_70 [1] : vector<8x128xf32> to vector<8xf32>
    %198 = vector.shape_cast %197 : vector<8xf32> to vector<8x1xf32>
    %cst_71 = arith.constant 3.125000e-02 : f32
    %199 = vector.broadcast %cst_71 : f32 to vector<8x1xf32>
    %200 = arith.mulf %198, %199 : vector<8x1xf32>
    %201 = arith.mulf %194, %194 : vector<8x128xf32>
    %cst_72 = arith.constant dense<0.000000e+00> : vector<8xf32>
    %202 = vector.multi_reduction <add>, %201, %cst_72 [1] : vector<8x128xf32> to vector<8xf32>
    %203 = vector.shape_cast %202 : vector<8xf32> to vector<8x1xf32>
    %cst_73 = arith.constant 3.125000e-02 : f32
    %204 = vector.broadcast %cst_73 : f32 to vector<8x1xf32>
    %205 = arith.mulf %203, %204 : vector<8x1xf32>
    %206 = arith.mulf %200, %200 : vector<8x1xf32>
    %207 = arith.subf %205, %206 : vector<8x1xf32>
    %cst_74 = arith.constant 9.99999974E-6 : f32
    %208 = vector.broadcast %cst_74 : f32 to vector<8x1xf32>
    %209 = arith.addf %207, %208 : vector<8x1xf32>
    %210 = math.rsqrt %209 : vector<8x1xf32>
    %211 = vector.broadcast %200 : vector<8x1xf32> to vector<8x128xf32>
    %212 = arith.subf %194, %211 : vector<8x128xf32>
    %213 = vector.broadcast %210 : vector<8x1xf32> to vector<8x128xf32>
    %214 = arith.mulf %212, %213 : vector<8x128xf32>
    %215 = vector.broadcast %195 : vector<1x128xf32> to vector<8x128xf32>
    %216 = arith.mulf %214, %215 : vector<8x128xf32>
    %217 = vector.broadcast %196 : vector<1x128xf32> to vector<8x128xf32>
    %218 = arith.addf %216, %217 : vector<8x128xf32>
    %c0_75 = arith.constant 0 : index
    %c0_76 = arith.constant 0 : index
    %c0_77 = arith.constant 0 : index
    %219 = vector.load %arg14[%c0_75, %c0_76, %c0_77] : memref<1x8x128xf32, #tpu.memory_space<vmem>>, vector<1x8x128xf32>
    %220 = vector.shape_cast %219 : vector<1x8x128xf32> to vector<8x128xf32>
    %221 = vector.shape_cast %218 : vector<8x128xf32> to vector<1x8x128xf32>
    tpu.vector_store %arg14[%c0_75, %c0_76, %c0_77], %221 {strides = array<i32>} : memref<1x8x128xf32, #tpu.memory_space<vmem>>, vector<1x8x128xf32>,
    return
  }
  func.func @transform_0(%arg0: i32) -> (i32, i32, i32) {
    %c0_i32 = arith.constant 0 : i32
    %c0_i32_0 = arith.constant 0 : i32
    %c0_i32_1 = arith.constant 0 : i32
    return %arg0, %c0_i32, %c0_i32_0 : i32, i32, i32
  }
  func.func @transform_1(%arg0: i32) -> (i32, i32) {
    %c0_i32 = arith.constant 0 : i32
    %c0_i32_0 = arith.constant 0 : i32
    %c0_i32_1 = arith.constant 0 : i32
    return %c0_i32, %c0_i32_0 : i32, i32
  }
  func.func @transform_2(%arg0: i32) -> (i32, i32) {
    %c0_i32 = arith.constant 0 : i32
    %c0_i32_0 = arith.constant 0 : i32
    %c0_i32_1 = arith.constant 0 : i32
    return %c0_i32, %c0_i32_0 : i32, i32
  }
  func.func @transform_3(%arg0: i32) -> (i32, i32) {
    %c0_i32 = arith.constant 0 : i32
    %c0_i32_0 = arith.constant 0 : i32
    %c0_i32_1 = arith.constant 0 : i32
    return %c0_i32, %c0_i32_0 : i32, i32
  }
  func.func @transform_4(%arg0: i32) -> (i32, i32) {
    %c0_i32 = arith.constant 0 : i32
    %c0_i32_0 = arith.constant 0 : i32
    %c0_i32_1 = arith.constant 0 : i32
    return %c0_i32, %c0_i32_0 : i32, i32
  }
  func.func @transform_5(%arg0: i32) -> (i32, i32) {
    %c0_i32 = arith.constant 0 : i32
    %c0_i32_0 = arith.constant 0 : i32
    %c0_i32_1 = arith.constant 0 : i32
    return %c0_i32, %c0_i32_0 : i32, i32
  }
  func.func @transform_6(%arg0: i32) -> (i32, i32) {
    %c0_i32 = arith.constant 0 : i32
    %c0_i32_0 = arith.constant 0 : i32
    %c0_i32_1 = arith.constant 0 : i32
    return %c0_i32, %c0_i32_0 : i32, i32
  }
  func.func @transform_7(%arg0: i32) -> (i32, i32) {
    %c0_i32 = arith.constant 0 : i32
    %c0_i32_0 = arith.constant 0 : i32
    %c0_i32_1 = arith.constant 0 : i32
    return %c0_i32, %c0_i32_0 : i32, i32
  }
  func.func @transform_8(%arg0: i32) -> (i32, i32) {
    %c0_i32 = arith.constant 0 : i32
    %c0_i32_0 = arith.constant 0 : i32
    %c0_i32_1 = arith.constant 0 : i32
    return %c0_i32, %c0_i32_0 : i32, i32
  }
  func.func @transform_9(%arg0: i32) -> (i32, i32) {
    %c0_i32 = arith.constant 0 : i32
    %c0_i32_0 = arith.constant 0 : i32
    %c0_i32_1 = arith.constant 0 : i32
    return %c0_i32, %c0_i32_0 : i32, i32
  }
  func.func @transform_10(%arg0: i32) -> (i32, i32) {
    %c0_i32 = arith.constant 0 : i32
    %c0_i32_0 = arith.constant 0 : i32
    %c0_i32_1 = arith.constant 0 : i32
    return %c0_i32, %c0_i32_0 : i32, i32
  }
  func.func @transform_11(%arg0: i32) -> (i32, i32) {
    %c0_i32 = arith.constant 0 : i32
    %c0_i32_0 = arith.constant 0 : i32
    %c0_i32_1 = arith.constant 0 : i32
    return %c0_i32, %c0_i32_0 : i32, i32
  }
  func.func @transform_12(%arg0: i32) -> (i32, i32) {
    %c0_i32 = arith.constant 0 : i32
    %c0_i32_0 = arith.constant 0 : i32
    %c0_i32_1 = arith.constant 0 : i32
    return %c0_i32, %c0_i32_0 : i32, i32
  }
  func.func @transform_13(%arg0: i32) -> (i32, i32, i32) {
    %c0_i32 = arith.constant 0 : i32
    %c0_i32_0 = arith.constant 0 : i32
    %c0_i32_1 = arith.constant 0 : i32
    return %arg0, %c0_i32, %c0_i32_0 : i32, i32, i32
  }
}

</mosaic_0001>

<bundles_post_ra>
// kernel: transformer_decoder_forward.5
= control target key start
LH: loop header
LB: loop body
LE: loop exit
PB: predicated region body
PF: predicated region fallthrough
CT: control target
= control target key end

     0   :  { %10 = vsyncpa [#allocation3], 0  ;;  %s1033_s18 = smov 0   ;;  %s1078_s0 = inlined_call_operand.vmem [shape: f32[2,8,128], index: 0, kind: input, shape index: {}]   ;;  %s1079_s1 = inlined_call_operand.hbm [shape: bf16[5,128,128], index: 1, kind: input, shape index: {}]   ;;  %s1080_s2 = inlined_call_operand.vmem [shape: f32[1,128], index: 2, kind: input, shape index: {}]   ;;  %s1081_s3 = inlined_call_operand.vmem [shape: f32[1,128], index: 3, kind: input, shape index: {}]   ;;  %s1082_s4 = inlined_call_operand.vmem [shape: f32[1,128], index: 4, kind: input, shape index: {}]   ;;  %s1083_s5 = inlined_call_operand.vmem [shape: f32[2,4,128], index: 5, kind: output, shape index: {}]  }
   0x1 LB: > { %s168_s21 = sshll.u32 %s1079_s1, 4  ;;  %s1042_s22 = sadd.s32 4294967295, %s998_s18   ;;  %s998_s18 = sphi %s1033_s18, %s16_s18   ;;  %s169_s21 = int_to_ptr.hbm [resolvable:$true] %s168_s21 }
   0x2   : > { %p725_p0 = scmp.ge.s32.totalorder %s998_s18, 1  ;;  %p157_p1 = scmp.lt.s32.totalorder %s998_s18, 3 }
   0x3   : > { %p942_p2 = scmp.eq.s32.totalorder %s1042_s22, 0  ;;  %s1000_s23 = smov [#allocation2]  }
   0x4   : > { %p158_p3 = pnand %p725_p0, %p157_p1  ;;  %s170_s24 = sshll.u32 %s1000_s23, 4  ;;  %s171_s24 = int_to_ptr.vmem [resolvable:$true] %s170_s24 }
   0x5   : > { %s1001_s25 = smov 64   ;;  %s1002_s26 = smov 4  }
   0x6   : > { %p938_p4 = pneg %p158_p3  ;;  %202 = sbr.rel (%p158_p3) target bundleno = 214 (0xd6), region = 40 }
   0x8   : > { %p939_p5 = pnand %p942_p2, %p938_p4 }
   0xa   : > { %941 = dma.hbm_to_vmem [thread:$0]  (!%p939_p5), %s169_s21, 5120, %s171_s24, [#allocation3], %s1001_s25, %s1001_s25, %s1002_s26  }
   0xb   : > { %993 = dma.done.wait (%p942_p2), [#allocation3], 5120  }
   0xc   : > { %995 = vsyncadd (%p942_p2), [#allocation3], 4294962176  ;;  %v909_v0 = vld [vmem:[#allocation2 + $0x78] sm:$0xff]  ;;  %v908_v3 = vld [vmem:[#allocation2 + $0x70] sm:$0xff]  ;;  %p229_p6 = scmp.lt.s32.totalorder %s1042_s22, 1 }
   0xd   : > { %v917_v1 = vld [vmem:[#allocation2 + $0xb8] sm:$0xff]  ;;  %322 = vmatpush.bf16.msra.mxu0 %v909_v0  ;;  %v916_v5 = vld [vmem:[#allocation2 + $0xb0] sm:$0xff]  ;;  %v907_v8 = vld [vmem:[#allocation2 + $0x68] sm:$0xff] }
   0xe   : > { %v925_v2 = vld [vmem:[#allocation2 + $0xf8] sm:$0xff]  ;;  %463 = vmatpush.bf16.msra.mxu2 %v917_v1  ;;  %v924_v6 = vld [vmem:[#allocation2 + $0xf0] sm:$0xff]  ;;  %v915_v9 = vld [vmem:[#allocation2 + $0xa8] sm:$0xff]  ;;  %s1085_s22 = smov (!%p229_p6, %s1042_s22), 1 }
   0xf   : > { %v901_v4 = vld [vmem:[#allocation2 + $0x38] sm:$0xff]  ;;  %544 = vmatpush.bf16.msra.mxu3 %v925_v2  ;;  %v900_v7 = vld [vmem:[#allocation2 + $0x30] sm:$0xff]  ;;  %v923_v10 = vld [vmem:[#allocation2 + $0xe8] sm:$0xff]  ;;  %s730_s27 = sshll.u32 %s1085_s22, 3  ;;  %s731_s10 = sshll.u32 %s1085_s22, 2 }
  0x10   : > { %383 = vmatpush.bf16.msra.mxu1 %v901_v4  ;;  %v899_v11 = vld [vmem:[#allocation2 + $0x28] sm:$0xff]  ;;  %v906_v12 = vld [vmem:[#allocation2 + $0x60] sm:$0xff]  ;;  %v905_v16 = vld [vmem:[#allocation2 + $0x58] sm:$0xff]  ;;  %s1055_s30 = scalar_lea.vmem %s1078_s0, %s730_s27  ;;  %s236_s15 = scalar_lea.vmem %s1083_s5, %s731_s10 }
  0x11   : > { %323 = vmatpush.bf16.msra.mxu0 %v908_v3  ;;  %v914_v13 = vld [vmem:[#allocation2 + $0xa0] sm:$0xff]  ;;  %v913_v17 = vld [vmem:[#allocation2 + $0x98] sm:$0xff]  ;;  %v904_v20 = vld [vmem:[#allocation2 + $0x50] sm:$0xff] }
  0x12   : > { %464 = vmatpush.bf16.msra.mxu2 %v916_v5  ;;  %v922_v14 = vld [vmem:[#allocation2 + $0xe0] sm:$0xff]  ;;  %v921_v18 = vld [vmem:[#allocation2 + $0xd8] sm:$0xff]  ;;  %v912_v21 = vld [vmem:[#allocation2 + $0x90] sm:$0xff] }
  0x13   : > { %545 = vmatpush.bf16.msra.mxu3 %v924_v6  ;;  %v898_v15 = vld [vmem:[#allocation2 + $0x20] sm:$0xff]  ;;  %v897_v19 = vld [vmem:[#allocation2 + $0x18] sm:$0xff]  ;;  %v920_v22 = vld [vmem:[#allocation2 + $0xd0] sm:$0xff] }
  0x14   : > { %384 = vmatpush.bf16.msra.mxu1 %v900_v7  ;;  %v896_v23 = vld [vmem:[#allocation2 + $0x10] sm:$0xff]  ;;  %v903_v24 = vld [vmem:[#allocation2 + $0x48] sm:$0xff]  ;;  %v902_v28 = vld [vmem:[#allocation2 + $0x40] sm:$0xff] }
  0x15   : > { %324 = vmatpush.bf16.msra.mxu0 %v907_v8  ;;  %v911_v25 = vld [vmem:[#allocation2 + $0x88] sm:$0xff]  ;;  %v255_v29 = vld [vmem:[%s1055_s30 + $0x1] sm:$0xf]  ;;  %v933_v30 = vld [vmem:[#allocation2 + $0x138] sm:$0xff] }
  0x16   : > { %465 = vmatpush.bf16.msra.mxu2 %v915_v9  ;;  %v919_v26 = vld [vmem:[#allocation2 + $0xc8] sm:$0xff]  ;;  %v910_v31 = vld [vmem:[#allocation2 + $0x80] sm:$0xff]  ;;  %v256_v36 = vpack.c.bf16 %v255_v29, %v255_v29  ;;  %v932_v39 = vld [vmem:[#allocation2 + $0x130] sm:$0xff] }
  0x17   : > { %546 = vmatpush.bf16.msra.mxu3 %v923_v10  ;;  %v895_v27 = vld [vmem:[#allocation2 + $0x8] sm:$0xff]  ;;  %v396_v32 = vld [vmem:[%s1055_s30 + $0x2] sm:$0xf]  ;;  %v929_v44 = vld [vmem:[#allocation2 + $0x118] sm:$0xff] }
  0x18   : > { %385 = vmatpush.bf16.msra.mxu1 %v899_v11  ;;  %v918_v33 = vld [vmem:[#allocation2 + $0xc0] sm:$0xff]  ;;  %v397_v38 = vpack.c.bf16 %v396_v32, %v396_v32  ;;  %v931_v42 = vld [vmem:[#allocation2 + $0x128] sm:$0xff]  ;;  %v928_v45 = vld [vmem:[#allocation2 + $0x110] sm:$0xff] }
  0x19   : > { %325 = vmatpush.bf16.msra.mxu0 %v906_v12  ;;  %v894_v34 = vld [vmem:[#allocation2] sm:$0xff]  ;;  %v927_v46 = vld [vmem:[#allocation2 + $0x108] sm:$0xff] }
  0x1a   : > { %466 = vmatpush.bf16.msra.mxu2 %v914_v13  ;;  %v477_v35 = vld [vmem:[%s1055_s30 + $0x3] sm:$0xf]  ;;  %v955_v61 = vld [vmem:[%s1080_s2] ss:$0 sm:$0xff] }
  0x1b   : > { %547 = vmatpush.bf16.msra.mxu3 %v922_v14  ;;  %v237_v37 = vld [vmem:[%s1055_s30] sm:$0xf]  ;;  %v478_v40 = vpack.c.bf16 %v477_v35, %v477_v35  ;;  %v558_v48 = vld [vmem:[%s1055_s30 + $0x4] sm:$0xf] }
  0x1c   : > { %386 = vmatpush.bf16.msra.mxu1 %v898_v15  ;;  %v238_v41 = vpack.c.bf16 %v237_v37, %v237_v37  ;;  %v930_v43 = vld [vmem:[#allocation2 + $0x120] sm:$0xff]  ;;  %v559_v49 = vpack.c.bf16 %v558_v48, %v558_v48 }
  0x1d   : > { %326 = vmatpush.bf16.msra.mxu0 %v905_v16  ;;  %v926_v47 = vld [vmem:[#allocation2 + $0x100] sm:$0xff] }
  0x1e   : > { %467 = vmatpush.bf16.msra.mxu2 %v913_v17  ;;  %v956_v1 = vld [vmem:[%s1081_s3] ss:$0 sm:$0xff] }
  0x1f   : > { %548 = vmatpush.bf16.msra.mxu3 %v921_v18  ;;  %v957_v3 = vld [vmem:[%s1082_s4] ss:$0 sm:$0xff] }
  0x20   : > { %387 = vmatpush.bf16.msra.mxu1 %v897_v19 }
  0x21   : > { %327 = vmatpush.bf16.msra.mxu0 %v904_v20 }
  0x22   : > { %468 = vmatpush.bf16.msra.mxu2 %v912_v21 }
  0x23   : > { %549 = vmatpush.bf16.msra.mxu3 %v920_v22 }
  0x24   : > { %388 = vmatpush.bf16.msra.mxu1 %v896_v23 }
  0x25   : > { %328 = vmatpush.bf16.msra.mxu0 %v903_v24 }
  0x26   : > { %469 = vmatpush.bf16.msra.mxu2 %v911_v25 }
  0x27   : > { %550 = vmatpush.bf16.msra.mxu3 %v919_v26 }
  0x28   : > { %389 = vmatpush.bf16.msra.mxu1 %v895_v27 }
  0x29   : > { %329 = vmatpush.bf16.msra.mxu0 %v902_v28 }
  0x2a   : > { %470 = vmatpush.bf16.msra.mxu2 %v910_v31 }
  0x2b   : > { %551 = vmatpush.bf16.msra.mxu3 %v918_v33 }
  0x2c   : > { %390 = vmatpush.bf16.msra.mxu1 %v894_v34  ;;  %330 = vmatmul.bf16.vlgmr.msra.gmra.mxu0 %v256_v36 }
  0x2d   : > { %625 = vmatpush.bf16.msrb.mxu0 %v933_v30  ;;  %471 = vmatmul.bf16.vlgmr.msra.gmra.mxu2 %v397_v38 }
  0x2e   : > { %552 = vmatmul.bf16.vlgmr.msra.gmra.mxu3 %v478_v40 }
  0x2f   : > { %391 = vmatmul.bf16.vlgmr.msra.gmra.mxu1 %v238_v41 }
  0x31   : > { %626 = vmatpush.bf16.msrb.mxu0 %v932_v39 }
  0x35   : > { %627 = vmatpush.bf16.msrb.mxu0 %v931_v42 }
  0x39   : > { %628 = vmatpush.bf16.msrb.mxu0 %v930_v43 }
  0x3d   : > { %629 = vmatpush.bf16.msrb.mxu0 %v929_v44 }
  0x41   : > { %630 = vmatpush.bf16.msrb.mxu0 %v928_v45 }
  0x45   : > { %631 = vmatpush.bf16.msrb.mxu0 %v927_v46 }
  0x49   : > { %632 = vmatpush.bf16.msrb.mxu0 %v926_v47 }
  0x4c   : > { %633 = vmatmul.bf16.vlgmr.msrb.gmra.mxu0 %v559_v49 }
  0xa9   : > { %v331_v50 = vpop.f32.mrf.mxu0 }
  0xac   : > { %v392_v51 = vpop.f32.mrf.mxu1 }
  0xad   : > { %v393_v58 = vadd.f32 %v392_v51, %v331_v50 }
  0xb0   : > { %v472_v52 = vpop.f32.mrf.mxu2 }
  0xb1   : > { %v333_v53 = vpop.f32.mrf.mxu0  ;;  %v553_v54 = vpop.f32.mrf.mxu3  ;;  %v476_v59 = vadd.f32 %v472_v52, %v393_v58 }
  0xb3   : > { %v557_v60 = vadd.f32 %v553_v54, %v476_v59 }
  0xb4   : > { %v394_v55 = vpop.f32.mrf.mxu1 }
  0xb8   : > { %v474_v56 = vpop.f32.mrf.mxu2 }
  0xb9   : > { %v555_v57 = vpop.f32.mrf.mxu3 }
  0xc9   : > { %v634_v62 = vpop.f32.mrf.mxu0 }
  0xca   : > { %v638_v63 = vadd.f32 %v634_v62, %v557_v60 }
  0xcc   : > { %v643_v0 = vadd.f32 %v955_v61, %v638_v63 }
  0xce   : > { %vm644_vm0 = vcmp.gt.f32.partialorder %v643_v0, 0.0  ;;  %v645_v2 = vmul.f32 0.2, %v643_v0 }
  0xd0   : > { %v646_v4 = vsel %vm644_vm0, %v643_v0, %v645_v2 }
  0xd1   : > { %v651_v5 = vmul.f32 %v956_v1, %v646_v4  ;;  %v636_v6 = vpop.f32.mrf.mxu0 }
  0xd3   : > { %v656_v7 = vadd.f32 %v957_v3, %v651_v5 }
  0xd5   : > { %657 = vst [vmem:[%s236_s15] sm:$0xf] %v656_v7 }
  0xd6 PF: > { %s16_s18 = sadd.s32 1, %s998_s18  }
  0xd7   : > { %p13_p7 = scmp.ge.s32.totalorder %s16_s18, 4  }
  0xd9   :  { %15 = sbr.rel (!%p13_p7) target bundleno = 1 (0x1), region = 79 }
  0xde   :  { %677 = vsyncpa [#allocation3], 1 }
  0xdf   :  { %679 = vsyncpa [#allocation3 + $0x1], 1 }

// kernel: transformer_decoder_forward.7
= control target key start
LH: loop header
LB: loop body
LE: loop exit
PB: predicated region body
PF: predicated region fallthrough
CT: control target
= control target key end

     0   :  { %s224_s1 = inlined_call_operand.vmem [shape: bf16[128,128], index: 1, kind: input, shape index: {}]   ;;  %s225_s2 = inlined_call_operand.vmem [shape: f32[1,128], index: 2, kind: input, shape index: {}]   ;;  %s226_s0 = inlined_call_operand.vmem [shape: f32[16,128], index: 0, kind: input, shape index: {}]   ;;  %s227_s3 = inlined_call_operand.vmem [shape: f32[16,128], index: 3, kind: output, shape index: {}]  }
   0x1   :  { %v163_v0 = vld [vmem:[%s224_s1 + $0x38] sm:$0xff]  ;;  %v162_v1 = vld [vmem:[%s224_s1 + $0x30] sm:$0xff]  ;;  %v161_v2 = vld [vmem:[%s224_s1 + $0x28] sm:$0xff] }
   0x2   :  { %89 = vmatpush.bf16.msra.mxu0 %v163_v0  ;;  %v160_v3 = vld [vmem:[%s224_s1 + $0x20] sm:$0xff]  ;;  %v159_v4 = vld [vmem:[%s224_s1 + $0x18] sm:$0xff]  ;;  %v158_v5 = vld [vmem:[%s224_s1 + $0x10] sm:$0xff] }
   0x3   :  { %v157_v6 = vld [vmem:[%s224_s1 + $0x8] sm:$0xff]  ;;  %v156_v7 = vld [vmem:[%s224_s1] sm:$0xff] }
   0x4   :  { %v22_v8 = vld [vmem:[%s226_s0] sm:$0xff]  ;;  %v23_v9 = vld [vmem:[%s226_s0 + $0x8] sm:$0xff] }
   0x5   :  { %v24_v10 = vpack.c.bf16 %v23_v9, %v22_v8  ;;  %v164_v11 = vld [vmem:[%s225_s2] ss:$0 sm:$0xff] }
   0x6   :  { %90 = vmatpush.bf16.msra.mxu0 %v162_v1 }
   0xa   :  { %91 = vmatpush.bf16.msra.mxu0 %v161_v2 }
   0xe   :  { %92 = vmatpush.bf16.msra.mxu0 %v160_v3 }
  0x12   :  { %93 = vmatpush.bf16.msra.mxu0 %v159_v4 }
  0x16   :  { %94 = vmatpush.bf16.msra.mxu0 %v158_v5 }
  0x1a   :  { %95 = vmatpush.bf16.msra.mxu0 %v157_v6 }
  0x1e   :  { %96 = vmatpush.bf16.msra.mxu0 %v156_v7 }
  0x21   :  { %97 = vmatmul.bf16.vlgmr.msra.gmra.mxu0 %v24_v10 }
  0x9e   :  { %v98_v12 = vpop.f32.mrf.mxu0 }
  0x9f   :  { %v116_v13 = vadd.f32 %v164_v11, %v98_v12 }
  0xa1   :  { %118 = vst [vmem:[%s227_s3] sm:$0xff] %v116_v13 }
  0xa6   :  { %v100_v14 = vpop.f32.mrf.mxu0 }
  0xa7   :  { %v117_v15 = vadd.f32 %v164_v11, %v100_v14 }
  0xa9   :  { %119 = vst [vmem:[%s227_s3 + $0x8] sm:$0xff] %v117_v15 }

// kernel: transformer_decoder_forward.9
= control target key start
LH: loop header
LB: loop body
LE: loop exit
PB: predicated region body
PF: predicated region fallthrough
CT: control target
= control target key end

     0   :  { %10 = vsyncpa [#allocation3], 0  ;;  %s1238_s0 = inlined_call_operand.vmem [shape: f32[2,12,128], index: 0, kind: input, shape index: {}]   ;;  %s1239_s1 = inlined_call_operand.hbm [shape: bf16[5,128,128], index: 1, kind: input, shape index: {}]   ;;  %s1240_s2 = inlined_call_operand.vmem [shape: f32[1,128], index: 2, kind: input, shape index: {}]   ;;  %s1241_s3 = inlined_call_operand.vmem [shape: f32[1,128], index: 3, kind: input, shape index: {}, may-alias: {3,4}]   ;;  %s1242_s4 = inlined_call_operand.vmem [shape: f32[1,128], index: 4, kind: input, shape index: {}, may-alias: {3,4}]   ;;  %s1243_s5 = inlined_call_operand.hbm [shape: f32[2,8,128], index: 5, kind: output, shape index: {}]  }
   0x1   :  { %11 = vsyncpa [#allocation4], 0 }
   0x2   :  { %13 = vsyncpa [#allocation4 + $0x1], 0  ;;  %s1133_s18 = smov 0   ;;  %s1135_s19 = smov 0  }
   0x3   :  { %s1137_s20 = smov 0   ;;  %s1139_s21 = smov 0  }
   0x4 LB: > { %s1154_s3 = sadd.s32 4294967295, %s1098_s21   ;;  %s735_s4 = sadd.s32 4294967294, %s1098_s21   ;;  %s1098_s21 = sphi %s1139_s21, %s1249_s21   ;;  %s1094_s20 = sphi %s1137_s20, %s1248_s20   ;;  %s1090_s19 = sphi %s1135_s19, %s1247_s19   ;;  %s1086_s18 = sphi %s1133_s18, %s1246_s18  }
   0x5   : > { %s1158_s22 = sadd.s32 1, %s1098_s21   ;;  %s136_s23 = sadd.s32 1, %s1094_s20 }
   0x6   : > { %s133_s24 = ssub.s32 %s1098_s21, %s1158_s22  ;;  %p146_p0 = scmp.ne.s32.totalorder %s1094_s20, %s1090_s19 }
   0x7   : > { %p134_p1 = scmp.eq.s32.totalorder %s133_s24, 0  ;;  %p147_p2 = scmp.eq.s32.totalorder %s1154_s3, 1 }
   0x8   : > { %p152_p3 = scmp.ne.s32.totalorder %s1090_s19, %s1086_s18  ;;  %p153_p4 = scmp.eq.s32.totalorder %s735_s4, 1 }
   0x9   : > { %s1169_s25 = scalar_select %p134_p1, %s1094_s20, %s136_s23  }
   0xa   : > { %p1171_p5 = por %p147_p2, %p146_p0  ;;  %p1175_p6 = por %p153_p4, %p152_p3 }
   0xb   : > { %p736_p7 = scmp.ge.s32.totalorder %s1098_s21, 1  ;;  %p160_p8 = scmp.lt.s32.totalorder %s1098_s21, 3 }
   0xc   : > { %p963_p9 = scmp.eq.s32.totalorder %s1154_s3, 0  ;;  %s171_s30 = sshll.u32 %s1239_s1, 4  ;;  %s172_s30 = int_to_ptr.hbm [resolvable:$true] %s171_s30 }
   0xd   : > { %p161_p10 = pnand %p736_p7, %p160_p8  ;;  %s1100_s6 = smov [#allocation2]  }
   0xe   : > { %s173_s7 = sshll.u32 %s1100_s6, 4  ;;  %s1101_s8 = smov 64   ;;  %s174_s7 = int_to_ptr.vmem [resolvable:$true] %s173_s7 }
   0xf   : > { %p955_p11 = pneg %p161_p10  ;;  %s1102_s9 = smov 4  }
  0x10   : > { %206 = sbr.rel (%p161_p10) target bundleno = 220 (0xdc), region = 40 }
  0x11   : > { %p956_p12 = pnand %p963_p9, %p955_p11 }
  0x13   : > { %958 = dma.hbm_to_vmem [thread:$0]  (!%p956_p12), %s172_s30, 5120, %s174_s7, [#allocation3], %s1101_s8, %s1101_s8, %s1102_s9  }
  0x15   : > { %1077 = dma.done.wait (%p963_p9), [#allocation3], 5120  }
  0x16   : > { %1079 = vsyncadd (%p963_p9), [#allocation3], 4294962176  ;;  %v924_v0 = vld [vmem:[#allocation2 + $0x78] sm:$0xff]  ;;  %v923_v3 = vld [vmem:[#allocation2 + $0x70] sm:$0xff]  ;;  %p235_p13 = scmp.lt.s32.totalorder %s1154_s3, 1  ;;  %s232_s15 = sand.u32 1, %s1090_s19  }
  0x17   : > { %v932_v1 = vld [vmem:[#allocation2 + $0xb8] sm:$0xff]  ;;  %325 = vmatpush.bf16.msra.mxu0 %v924_v0  ;;  %v931_v5 = vld [vmem:[#allocation2 + $0xb0] sm:$0xff]  ;;  %v922_v8 = vld [vmem:[#allocation2 + $0x68] sm:$0xff]  ;;  %s741_s16 = sshll.u32 %s232_s15, 3  ;;  %s905_s17 = sshll.u32 %s1154_s3, 3 }
  0x18   : > { %v940_v2 = vld [vmem:[#allocation2 + $0xf8] sm:$0xff]  ;;  %466 = vmatpush.bf16.msra.mxu2 %v932_v1  ;;  %v939_v6 = vld [vmem:[#allocation2 + $0xf0] sm:$0xff]  ;;  %v930_v9 = vld [vmem:[#allocation2 + $0xa8] sm:$0xff]  ;;  %s236_s10 = scalar_select %p235_p13, %s1154_s3, 1 }
  0x19   : > { %v916_v4 = vld [vmem:[#allocation2 + $0x38] sm:$0xff]  ;;  %547 = vmatpush.bf16.msra.mxu3 %v940_v2  ;;  %v915_v7 = vld [vmem:[#allocation2 + $0x30] sm:$0xff]  ;;  %v938_v10 = vld [vmem:[#allocation2 + $0xe8] sm:$0xff]  ;;  %s659_s24 = scalar_lea.hbm %s1243_s5, %s905_s17  ;;  %s234_s30 = scalar_lea.vmem [#allocation5], %s741_s16 }
  0x1a   : > { %386 = vmatpush.bf16.msra.mxu1 %v916_v4  ;;  %v914_v11 = vld [vmem:[#allocation2 + $0x28] sm:$0xff]  ;;  %v921_v12 = vld [vmem:[#allocation2 + $0x60] sm:$0xff]  ;;  %v920_v16 = vld [vmem:[#allocation2 + $0x58] sm:$0xff]  ;;  %s908_s11 = sshll.u32 %s236_s10, 4  ;;  %s661_s6 = sshll.u32 %s234_s30, 4  ;;  %s662_s6 = int_to_ptr.vmem [resolvable:$true] %s661_s6 }
  0x1b   : > { %326 = vmatpush.bf16.msra.mxu0 %v923_v3  ;;  %v929_v13 = vld [vmem:[#allocation2 + $0xa0] sm:$0xff]  ;;  %v928_v17 = vld [vmem:[#allocation2 + $0x98] sm:$0xff]  ;;  %v919_v20 = vld [vmem:[#allocation2 + $0x50] sm:$0xff]  ;;  %s1196_s14 = scalar_lea.vmem %s1238_s0, %s908_s11  ;;  %s663_s7 = sshll.u32 %s659_s24, 4  ;;  %s664_s7 = int_to_ptr.hbm [resolvable:$true] %s663_s7 }
  0x1c   : > { %467 = vmatpush.bf16.msra.mxu2 %v931_v5  ;;  %v937_v14 = vld [vmem:[#allocation2 + $0xe0] sm:$0xff]  ;;  %v936_v18 = vld [vmem:[#allocation2 + $0xd8] sm:$0xff]  ;;  %v927_v21 = vld [vmem:[#allocation2 + $0x90] sm:$0xff]  ;;  %s649_s3 = scalar_lea.sflag [#allocation4], %s232_s15  ;;  %s1046_s8 = sshra.s32 %s664_s7, 4  ;;  %s1047_s8 = int_to_ptr.hbm [resolvable:$true] %s1046_s8 }
  0x1d   : > { %548 = vmatpush.bf16.msra.mxu3 %v939_v6  ;;  %v913_v15 = vld [vmem:[#allocation2 + $0x20] sm:$0xff]  ;;  %v912_v19 = vld [vmem:[#allocation2 + $0x18] sm:$0xff]  ;;  %v935_v22 = vld [vmem:[#allocation2 + $0xd0] sm:$0xff]  ;;  %s1048_s9 = scalar_lea.hbm %s1047_s8, 8  ;;  %s1052_s12 = scalar_lea.hbm %s1243_s5, 16 }
  0x1e   : > { %387 = vmatpush.bf16.msra.mxu1 %v915_v7  ;;  %v911_v23 = vld [vmem:[#allocation2 + $0x10] sm:$0xff]  ;;  %v918_v24 = vld [vmem:[#allocation2 + $0x48] sm:$0xff]  ;;  %v917_v28 = vld [vmem:[#allocation2 + $0x40] sm:$0xff]  ;;  %p1049_p0 = scmp.ne.s32.totalorder %s1047_s8, %s1048_s9  ;;  %p1053_p3 = scmp.lt.s32.totalorder %s1047_s8, %s1243_s5 }
  0x1f   : > { %327 = vmatpush.bf16.msra.mxu0 %v922_v8  ;;  %v926_v25 = vld [vmem:[#allocation2 + $0x88] sm:$0xff]  ;;  %v948_v30 = vld [vmem:[#allocation2 + $0x138] sm:$0xff]  ;;  %v925_v31 = vld [vmem:[#allocation2 + $0x80] sm:$0xff]  ;;  %p1054_p4 = scmp.lt.s32.totalorder %s1052_s12, %s1048_s9 }
  0x20   : > { %468 = vmatpush.bf16.msra.mxu2 %v930_v9  ;;  %v934_v26 = vld [vmem:[#allocation2 + $0xc8] sm:$0xff]  ;;  %v933_v33 = vld [vmem:[#allocation2 + $0xc0] sm:$0xff]  ;;  %v947_v39 = vld [vmem:[#allocation2 + $0x130] sm:$0xff]  ;;  %p1050_p1 = pnand %p1049_p0, %p1171_p5 }
  0x21   : > { %549 = vmatpush.bf16.msra.mxu3 %v938_v10  ;;  %v910_v27 = vld [vmem:[#allocation2 + $0x8] sm:$0xff]  ;;  %v909_v34 = vld [vmem:[#allocation2] sm:$0xff]  ;;  %v944_v44 = vld [vmem:[#allocation2 + $0x118] sm:$0xff]  ;;  %p1055_p7 = por %p1054_p4, %p1053_p3 }
  0x22   : > { %388 = vmatpush.bf16.msra.mxu1 %v914_v11  ;;  %v258_v29 = vld [vmem:[%s1196_s14 + $0x1] sm:$0xff]  ;;  %v943_v45 = vld [vmem:[#allocation2 + $0x110] sm:$0xff]  ;;  %v1001_v61 = vld [vmem:[%s1240_s2] ss:$0 sm:$0xff]  ;;  %p1051_p2 = pneg %p1050_p1 }
  0x23   : > { %328 = vmatpush.bf16.msra.mxu0 %v921_v12  ;;  %v399_v32 = vld [vmem:[%s1196_s14 + $0x2] sm:$0xff]  ;;  %v259_v36 = vpack.c.bf16 %v258_v29, %v258_v29 }
  0x24   : > { %469 = vmatpush.bf16.msra.mxu2 %v929_v13  ;;  %v480_v35 = vld [vmem:[%s1196_s14 + $0x3] sm:$0xff]  ;;  %v400_v38 = vpack.c.bf16 %v399_v32, %v399_v32  ;;  %p1056_p8 = pnand %p1055_p7, %p1051_p2 }
  0x25   : > { %550 = vmatpush.bf16.msra.mxu3 %v937_v14  ;;  %v240_v37 = vld [vmem:[%s1196_s14] sm:$0xff]  ;;  %v481_v40 = vpack.c.bf16 %v480_v35, %v480_v35  ;;  %v946_v42 = vld [vmem:[#allocation2 + $0x128] sm:$0xff] }
  0x26   : > { %389 = vmatpush.bf16.msra.mxu1 %v913_v15  ;;  %v241_v41 = vpack.c.bf16 %v240_v37, %v240_v37  ;;  %v945_v43 = vld [vmem:[#allocation2 + $0x120] sm:$0xff]  ;;  %v942_v46 = vld [vmem:[#allocation2 + $0x108] sm:$0xff] }
  0x27   : > { %329 = vmatpush.bf16.msra.mxu0 %v920_v16  ;;  %v941_v47 = vld [vmem:[#allocation2 + $0x100] sm:$0xff] }
  0x28   : > { %470 = vmatpush.bf16.msra.mxu2 %v928_v17  ;;  %v561_v48 = vld [vmem:[%s1196_s14 + $0x4] sm:$0xff] }
  0x29   : > { %551 = vmatpush.bf16.msra.mxu3 %v936_v18  ;;  %v562_v49 = vpack.c.bf16 %v561_v48, %v561_v48 }
  0x2a   : > { %390 = vmatpush.bf16.msra.mxu1 %v912_v19 }
  0x2b   : > { %330 = vmatpush.bf16.msra.mxu0 %v919_v20 }
  0x2c   : > { %471 = vmatpush.bf16.msra.mxu2 %v927_v21 }
  0x2d   : > { %552 = vmatpush.bf16.msra.mxu3 %v935_v22 }
  0x2e   : > { %391 = vmatpush.bf16.msra.mxu1 %v911_v23 }
  0x2f   : > { %331 = vmatpush.bf16.msra.mxu0 %v918_v24 }
  0x30   : > { %472 = vmatpush.bf16.msra.mxu2 %v926_v25 }
  0x31   : > { %553 = vmatpush.bf16.msra.mxu3 %v934_v26 }
  0x32   : > { %392 = vmatpush.bf16.msra.mxu1 %v910_v27 }
  0x33   : > { %332 = vmatpush.bf16.msra.mxu0 %v917_v28 }
  0x34   : > { %473 = vmatpush.bf16.msra.mxu2 %v925_v31 }
  0x35   : > { %554 = vmatpush.bf16.msra.mxu3 %v933_v33 }
  0x36   : > { %393 = vmatpush.bf16.msra.mxu1 %v909_v34  ;;  %333 = vmatmul.bf16.vlgmr.msra.gmra.mxu0 %v259_v36 }
  0x37   : > { %628 = vmatpush.bf16.msrb.mxu0 %v948_v30  ;;  %474 = vmatmul.bf16.vlgmr.msra.gmra.mxu2 %v400_v38 }
  0x38   : > { %555 = vmatmul.bf16.vlgmr.msra.gmra.mxu3 %v481_v40 }
  0x39   : > { %394 = vmatmul.bf16.vlgmr.msra.gmra.mxu1 %v241_v41 }
  0x3b   : > { %629 = vmatpush.bf16.msrb.mxu0 %v947_v39 }
  0x3f   : > { %630 = vmatpush.bf16.msrb.mxu0 %v946_v42 }
  0x43   : > { %631 = vmatpush.bf16.msrb.mxu0 %v945_v43 }
  0x47   : > { %632 = vmatpush.bf16.msrb.mxu0 %v944_v44 }
  0x4b   : > { %633 = vmatpush.bf16.msrb.mxu0 %v943_v45 }
  0x4f   : > { %634 = vmatpush.bf16.msrb.mxu0 %v942_v46 }
  0x53   : > { %635 = vmatpush.bf16.msrb.mxu0 %v941_v47 }
  0x56   : > { %636 = vmatmul.bf16.vlgmr.msrb.gmra.mxu0 %v562_v49 }
  0xb3   : > { %v334_v50 = vpop.f32.mrf.mxu0 }
  0xb6   : > { %v395_v51 = vpop.f32.mrf.mxu1 }
  0xb7   : > { %v396_v58 = vadd.f32 %v395_v51, %v334_v50 }
  0xba   : > { %v475_v52 = vpop.f32.mrf.mxu2 }
  0xbb   : > { %v336_v53 = vpop.f32.mrf.mxu0  ;;  %v556_v54 = vpop.f32.mrf.mxu3  ;;  %v479_v59 = vadd.f32 %v475_v52, %v396_v58 }
  0xbd   : > { %v560_v60 = vadd.f32 %v556_v54, %v479_v59 }
  0xbe   : > { %v397_v55 = vpop.f32.mrf.mxu1 }
  0xc2   : > { %v477_v56 = vpop.f32.mrf.mxu2 }
  0xc3   : > { %v558_v57 = vpop.f32.mrf.mxu3 }
  0xd3   : > { %v637_v62 = vpop.f32.mrf.mxu0 }
  0xd4   : > { %v641_v63 = vadd.f32 %v637_v62, %v560_v60 }
  0xd6   : > { %v646_v0 = vadd.f32 %v1001_v61, %v641_v63 }
  0xd8   : > { %647 = vst [vmem:[%s234_s30] sm:$0xff] %v646_v0 }
  0xd9   : > { %1059 = shalt.err (!%p1056_p8)
}
  0xda   : > { %953 = dma.vmem_to_hbm [thread:$0]  (%p1171_p5), %s662_s6, 128, %s664_s7, %s649_s3  }
  0xdb   : > { %v639_v1 = vpop.f32.mrf.mxu0 }
  0xdc PF: > { %p965_p9 = scmp.ge.s32.totalorder %s1098_s21, 2  ;;  %s675_s15 = sand.u32 1, %s1086_s18  }
  0xdd   : > { %s676_s16 = scalar_lea.sflag [#allocation4], %s675_s15 }
  0xde   : > { %p960_p10 = pnand %p965_p9, %p1175_p6 }
  0xe0   : > { %p961_p11 = pneg %p960_p10 }
  0xe2   : > { %1081 = dma.done.wait (%p961_p11), %s676_s16, 128  }
  0xe3   : > { %1083 = vsyncadd (%p961_p11), %s676_s16, 4294967168  ;;  %p16_p12 = scmp.ge.s32.totalorder %s1158_s22, 4   ;;  %s1246_s18 = smov %s1090_s19 }
  0xe4   : > { %s1247_s19 = smov %s1094_s20  ;;  %s1248_s20 = smov %s1169_s25 }
  0xe5   : > { %s1249_s21 = smov %s1158_s22  ;;  %18 = sbr.rel (!%p16_p12) target bundleno = 4 (0x4), region = 84 }
  0xea   :  { %682 = vsyncpa [#allocation3], 1 }
  0xeb   :  { %684 = vsyncpa [#allocation3 + $0x1], 1 }
  0xec   :  { %685 = vsyncpa [#allocation4], 1 }
  0xed   :  { %687 = vsyncpa [#allocation4 + $0x1], 1 }

// kernel: transformer_decoder_forward.8
= control target key start
LH: loop header
LB: loop body
LE: loop exit
PB: predicated region body
PF: predicated region fallthrough
CT: control target
= control target key end

     0   :  { %s2013_s0 = inlined_call_operand.vmem [shape: f32[2,8,128], index: 0, kind: input, shape index: {}]   ;;  %s2014_s1 = inlined_call_operand.hbm [shape: bf16[128,384], index: 1, kind: input, shape index: {}]   ;;  %s2015_s2 = inlined_call_operand.vmem [shape: f32[1,384], index: 2, kind: input, shape index: {}]   ;;  %s2016_s3 = inlined_call_operand.vmem [shape: bf16[128,128], index: 3, kind: input, shape index: {}]   ;;  %s2017_s4 = inlined_call_operand.vmem [shape: f32[1,128], index: 4, kind: input, shape index: {}]   ;;  %s2018_s5 = inlined_call_operand.vmem [shape: f32[1,128], index: 5, kind: input, shape index: {}]   ;;  %s2019_s6 = inlined_call_operand.vmem [shape: f32[1,128], index: 6, kind: input, shape index: {}]   ;;  %s2020_s7 = inlined_call_operand.hbm [shape: bf16[128,128], index: 7, kind: input, shape index: {}]   ;;  %s2021_s8 = inlined_call_operand.vmem [shape: f32[1,128], index: 8, kind: input, shape index: {}]   ;;  %s2022_s9 = inlined_call_operand.hbm [shape: bf16[128,128], index: 9, kind: input, shape index: {}]   ;;  %s2023_s10 = inlined_call_operand.vmem [shape: f32[1,128], index: 10, kind: input, shape index: {}]   ;;  %s2024_s11 = inlined_call_operand.vmem [shape: f32[1,128], index: 11, kind: input, shape index: {}]   ;;  %s2025_s12 = inlined_call_operand.vmem [shape: f32[1,128], index: 12, kind: input, shape index: {}]   ;;  %s2026_s13 = inlined_call_operand.vmem [shape: f32[2,8,128], index: 13, kind: output, shape index: {}]  }
   0x1   :  { %2027 = sst [smem:[#allocation9_spill]] %s2014_s1 }
   0x2   :  { %18 = vsyncpa [#allocation3], 0 }
   0x3   :  { %19 = vsyncpa [#allocation5], 0  ;;  %s1851_s25 = smov 0  }
   0x4 LB: > { %s374_s28 = sshll.u32 %s2020_s7, 4  ;;  %s1860_s29 = sadd.s32 4294967295, %s1772_s25   ;;  %s1772_s25 = sphi %s1851_s25, %s25_s25   ;;  %s375_s28 = int_to_ptr.hbm [resolvable:$true] %s374_s28 }
   0x5   : > { %p1327_p0 = scmp.ge.s32.totalorder %s1772_s25, 1  ;;  %p334_p1 = scmp.lt.s32.totalorder %s1772_s25, 3 }
   0x6   : > { %p1618_p2 = scmp.eq.s32.totalorder %s1860_s29, 0  ;;  %s1774_s14 = smov [#allocation4]  }
   0x7   : > { %p1865_p3 = pnand %p1327_p0, %p334_p1  ;;  %s376_s15 = sshll.u32 %s1774_s14, 4  ;;  %s377_s15 = int_to_ptr.vmem [resolvable:$true] %s376_s15 }
   0x8   : > { %s2029_s1 = sld [smem:[#allocation9_spill]]  ;;  %s1775_s20 = smov [#allocation2]  }
   0x9   : > { %p1608_p4 = pneg %p1865_p3  ;;  %s347_s21 = sshll.u32 %s1775_s20, 4  ;;  %s348_s21 = int_to_ptr.vmem [resolvable:$true] %s347_s21 }
   0xa   : > { %s1776_s22 = smov 64   ;;  %s1777_s23 = smov 4  }
   0xb   : > { %p1876_p5 = pnand %p1618_p2, %p1608_p4  ;;  %s391_s27 = sshll.u32 %s2022_s9, 4  ;;  %s392_s27 = int_to_ptr.hbm [resolvable:$true] %s391_s27 }
   0xc   : > { %s1778_s14 = smov 192   ;;  %s1779_s16 = smov 12  }
   0xd   : > { %1614 = dma.hbm_to_vmem [thread:$0]  (!%p1876_p5), %s375_s28, 1024, %s377_s15, [#allocation5], %s1776_s22, %s1776_s22, %s1777_s23  }
   0xe   : > { %s345_s18 = sshll.u32 %s2029_s1, 4  ;;  %s1780_s17 = smov [#allocation6]   ;;  %s346_s18 = int_to_ptr.hbm [resolvable:$true] %s345_s18 }
   0xf   : > { %1611 = dma.hbm_to_vmem [thread:$0]  (!%p1876_p5), %s346_s18, 3072, %s348_s21, [#allocation3], %s1778_s14, %s1778_s14, %s1779_s16  }
  0x10   : > { %s393_s1 = sshll.u32 %s1780_s17, 4  ;;  %425 = sbr.rel (%p1865_p3) target bundleno = 1844 (0x734), region = 72  ;;  %s394_s1 = int_to_ptr.vmem [resolvable:$true] %s393_s1 }
  0x11   : > { %1617 = dma.hbm_to_vmem [thread:$0]  (!%p1876_p5), %s392_s27, 1024, %s394_s1, [#allocation5], %s1776_s22, %s1776_s22, %s1777_s23  }
  0x15   : > { %1763 = dma.done.wait (%p1618_p2), [#allocation3], 3072  }
  0x16   : > { %1765 = vsyncadd (%p1618_p2), [#allocation3], 4294964224 }
  0x17   : > { %1767 = dma.done.wait (%p1618_p2), [#allocation5], 2048  }
  0x18   : > { %1769 = vsyncadd (%p1618_p2), [#allocation5], 4294965248  ;;  %v1424_v0 = vld [vmem:[#allocation2 + $0xa8] sm:$0xf]  ;;  %v1570_v1 = vld [vmem:[#allocation2 + $0xb0] sm:$0xf0] }
  0x19   : > { %v1569_v2 = vld [vmem:[#allocation2 + $0xac] sm:$0xf]  ;;  %v1425_v3 = vor.u32 %v1570_v1, %v1424_v0  ;;  %v1426_v4 = vld [vmem:[#allocation2 + $0xb4] sm:$0xf0]  ;;  %v1432_v5 = vld [vmem:[#allocation2 + $0xb0] sm:$0xf] }
  0x1a   : > { %v1571_v6 = vld [vmem:[#allocation2 + $0xb8] sm:$0xf0]  ;;  %v1429_v7 = vor.u32 %v1569_v2, %v1426_v4  ;;  %v1412_v9 = vld [vmem:[#allocation2 + $0x90] sm:$0xf]  ;;  %v1566_v11 = vld [vmem:[#allocation2 + $0x94] sm:$0xf] }
  0x1b   : > { %v1433_v8 = vor.u32 %v1571_v6, %v1432_v5  ;;  %v1567_v10 = vld [vmem:[#allocation2 + $0x98] sm:$0xf0]  ;;  %657 = vmatpush.bf16.msra.mxu0 %v1425_v3  ;;  %v1414_v13 = vld [vmem:[#allocation2 + $0x9c] sm:$0xf0]  ;;  %v1420_v14 = vld [vmem:[#allocation2 + $0x98] sm:$0xf] }
  0x1c   : > { %v1413_v12 = vor.u32 %v1567_v10, %v1412_v9  ;;  %v1568_v15 = vld [vmem:[#allocation2 + $0xa0] sm:$0xf0]  ;;  %670 = vmatpush.bf16.msra.mxu1 %v1429_v7  ;;  %v1417_v16 = vor.u32 %v1566_v11, %v1414_v13  ;;  %v1400_v18 = vld [vmem:[#allocation2 + $0x78] sm:$0xf]  ;;  %v1563_v20 = vld [vmem:[#allocation2 + $0x7c] sm:$0xf]  ;;  %v697_v11 = vlaneseq }
  0x1d   : > { %683 = vmatpush.bf16.msra.mxu2 %v1433_v8  ;;  %v1421_v17 = vor.u32 %v1568_v15, %v1420_v14  ;;  %v1564_v19 = vld [vmem:[#allocation2 + $0x80] sm:$0xf0]  ;;  %v1402_v21 = vld [vmem:[#allocation2 + $0x84] sm:$0xf0]  ;;  %v1408_v22 = vld [vmem:[#allocation2 + $0x80] sm:$0xf] }
  0x1e   : > { %v1565_v23 = vld [vmem:[#allocation2 + $0x88] sm:$0xf0]  ;;  %v1401_v24 = vor.u32 %v1564_v19, %v1400_v18  ;;  %v1405_v25 = vor.u32 %v1563_v20, %v1402_v21  ;;  %v1388_v27 = vld [vmem:[#allocation2 + $0x60] sm:$0xf]  ;;  %v1560_v29 = vld [vmem:[#allocation2 + $0x64] sm:$0xf] }
  0x1f   : > { %658 = vmatpush.bf16.msra.mxu0 %v1413_v12  ;;  %v1409_v26 = vor.u32 %v1565_v23, %v1408_v22  ;;  %v1561_v28 = vld [vmem:[#allocation2 + $0x68] sm:$0xf0]  ;;  %v1390_v30 = vld [vmem:[#allocation2 + $0x6c] sm:$0xf0]  ;;  %v1396_v31 = vld [vmem:[#allocation2 + $0x68] sm:$0xf] }
  0x20   : > { %671 = vmatpush.bf16.msra.mxu1 %v1417_v16  ;;  %v1562_v32 = vld [vmem:[#allocation2 + $0x70] sm:$0xf0]  ;;  %p478_p6 = scmp.lt.s32.totalorder %s1860_s29, 1  ;;  %v1389_v33 = vor.u32 %v1561_v28, %v1388_v27  ;;  %v1393_v34 = vor.u32 %v1560_v29, %v1390_v30  ;;  %v1376_v36 = vld [vmem:[#allocation2 + $0x48] sm:$0xf]  ;;  %v698_v14 = vand.u32 127, %v697_v11 }
  0x21   : > { %684 = vmatpush.bf16.msra.mxu2 %v1421_v17  ;;  %v1397_v35 = vor.u32 %v1562_v32, %v1396_v31  ;;  %v1558_v37 = vld [vmem:[#allocation2 + $0x50] sm:$0xf0]  ;;  %v1557_v38 = vld [vmem:[#allocation2 + $0x4c] sm:$0xf]  ;;  %v1378_v39 = vld [vmem:[#allocation2 + $0x54] sm:$0xf0] }
  0x22   : > { %v1384_v40 = vld [vmem:[#allocation2 + $0x50] sm:$0xf]  ;;  %v1559_v41 = vld [vmem:[#allocation2 + $0x58] sm:$0xf0]  ;;  %s2036_s29 = smov (!%p478_p6, %s1860_s29), 1  ;;  %v1377_v42 = vor.u32 %v1558_v37, %v1376_v36  ;;  %v1381_v46 = vor.u32 %v1557_v38, %v1378_v39  ;;  %vm735_vm0 = vcmp.ge.s32.totalorder %v698_v14, 8 }
  0x23   : > { %659 = vmatpush.bf16.msra.mxu0 %v1401_v24  ;;  %v1364_v43 = vld [vmem:[#allocation2 + $0x30] sm:$0xf]  ;;  %v1555_v44 = vld [vmem:[#allocation2 + $0x38] sm:$0xf0]  ;;  %v1554_v45 = vld [vmem:[#allocation2 + $0x34] sm:$0xf]  ;;  %v1385_v47 = vor.u32 %v1559_v41, %v1384_v40 }
  0x24   : > { %672 = vmatpush.bf16.msra.mxu1 %v1405_v25  ;;  %v1366_v48 = vld [vmem:[#allocation2 + $0x3c] sm:$0xf0]  ;;  %v1372_v49 = vld [vmem:[#allocation2 + $0x38] sm:$0xf]  ;;  %v1556_v50 = vld [vmem:[#allocation2 + $0x40] sm:$0xf0]  ;;  %v1365_v51 = vor.u32 %v1555_v44, %v1364_v43 }
  0x25   : > { %685 = vmatpush.bf16.msra.mxu2 %v1409_v26  ;;  %s1336_s1 = sshll.u32 %s2036_s29, 3  ;;  %v1369_v52 = vor.u32 %v1554_v45, %v1366_v48  ;;  %v1373_v53 = vor.u32 %v1556_v50, %v1372_v49  ;;  %v1352_v54 = vld [vmem:[#allocation2 + $0x18] sm:$0xf]  ;;  %v1552_v55 = vld [vmem:[#allocation2 + $0x20] sm:$0xf0]  ;;  %vm736_vm1 = vcmp.lt.s32.totalorder %v698_v14, 16 }
  0x26   : > { %v1551_v56 = vld [vmem:[#allocation2 + $0x1c] sm:$0xf]  ;;  %v1354_v57 = vld [vmem:[#allocation2 + $0x24] sm:$0xf0]  ;;  %v1360_v58 = vld [vmem:[#allocation2 + $0x20] sm:$0xf]  ;;  %v1353_v60 = vor.u32 %v1552_v55, %v1352_v54  ;;  %s481_s15 = scalar_lea.vmem %s2013_s0, %s1336_s1  ;;  %s485_s22 = scalar_lea.vmem %s2026_s13, %s1336_s1 }
  0x27   : > { %660 = vmatpush.bf16.msra.mxu0 %v1389_v33  ;;  %v1553_v59 = vld [vmem:[#allocation2 + $0x28] sm:$0xf0]  ;;  %v1357_v61 = vor.u32 %v1551_v56, %v1354_v57  ;;  %v1340_v63 = vld [vmem:[#allocation2] sm:$0xf]  ;;  %v1548_v1 = vld [vmem:[#allocation2 + $0x4] sm:$0xf] }
  0x28   : > { %673 = vmatpush.bf16.msra.mxu1 %v1393_v34  ;;  %v1361_v62 = vor.u32 %v1553_v59, %v1360_v58  ;;  %v1549_v0 = vld [vmem:[#allocation2 + $0x8] sm:$0xf0]  ;;  %v1342_v2 = vld [vmem:[#allocation2 + $0xc] sm:$0xf0]  ;;  %v1348_v3 = vld [vmem:[#allocation2 + $0x8] sm:$0xf] }
  0x29   : > { %686 = vmatpush.bf16.msra.mxu2 %v1397_v35  ;;  %v1550_v4 = vld [vmem:[#allocation2 + $0x10] sm:$0xf0]  ;;  %v1341_v5 = vor.u32 %v1549_v0, %v1340_v63  ;;  %v1909_v6 = vld [vmem:[%s481_s15] sm:$0xff]  ;;  %v1345_v7 = vor.u32 %v1548_v1, %v1342_v2  ;;  %vm809_vm2 = vcmp.ge.s32.totalorder %v698_v14, 16  ;;  %vm810_vm3 = vcmp.lt.s32.totalorder %v698_v14, 24  ;;  %vm737_vm5 = vmand %vm735_vm0, %vm736_vm1 }
  0x2a   : > { %v1349_v8 = vor.u32 %v1550_v4, %v1348_v3  ;;  %v488_v9 = vpack.c.bf16 %v1909_v6, %v1909_v6  ;;  %v521_v10 = vld [vmem:[%s2015_s2] sm:$0x7]  ;;  %vm700_vm4 = vcmp.lt.s32.totalorder %v698_v14, 8  ;;  %vm1916_vm6 = vmand %vm809_vm2, %vm810_vm3  ;;  %vm773_vm9 = vcmask 1043456  }
  0x2b   : > { %661 = vmatpush.bf16.msra.mxu0 %v1377_v42  ;;  %v524_v12 = vperm.slane %v521_v10, 1  ;;  %v523_v15 = vperm.slane %v521_v10, 0  ;;  %v525_v19 = vperm.slane %v521_v10, 2  ;;  %vm1434_vm7 = vmpackc.low %vm700_vm4, %vm700_vm4  ;;  %vm720_vm11 = vcmask 64512  }
  0x2c   : > { %674 = vmatpush.bf16.msra.mxu1 %v1381_v46  ;;  %vm1437_vm8 = vmpackc.low %vm737_vm5, %vm737_vm5  ;;  %vm864_vm12 = vcmp.ge.s32.totalorder %v698_v14, 24  ;;  %vm865_vm13 = vcmp.lt.s32.totalorder %v698_v14, 32 }
  0x2d   : > { %687 = vmatpush.bf16.msra.mxu2 %v1385_v47  ;;  %vm1442_vm10 = vmpackc.low %vm1916_vm6, %vm1916_vm6 }
  0x2e   : > { %vm1937_vm14 = vmand %vm864_vm12, %vm865_vm13 }
  0x2f   : > { %662 = vmatpush.bf16.msra.mxu0 %v1365_v51  ;;  %vm1446_vm15 = vmpackc.low %vm1937_vm14, %vm1937_vm14 }
  0x30   : > { %675 = vmatpush.bf16.msra.mxu1 %v1369_v52 }
  0x31   : > { %688 = vmatpush.bf16.msra.mxu2 %v1373_v53 }
  0x33   : > { %663 = vmatpush.bf16.msra.mxu0 %v1353_v60 }
  0x34   : > { %676 = vmatpush.bf16.msra.mxu1 %v1357_v61 }
  0x35   : > { %689 = vmatpush.bf16.msra.mxu2 %v1361_v62 }
  0x37   : > { %664 = vmatpush.bf16.msra.mxu0 %v1341_v5 }
  0x38   : > { %677 = vmatpush.bf16.msra.mxu1 %v1345_v7 }
  0x39   : > { %690 = vmatpush.bf16.msra.mxu2 %v1349_v8 }
  0x3a   : > { %665 = vmatmul.bf16.vlgmr.msra.gmra.mxu0 %v488_v9 }
  0x3b   : > { %678 = vmatmul.bf16.vlgmr.msra.gmra.mxu1 %v488_v9 }
  0x3c   : > { %691 = vmatmul.bf16.vlgmr.msra.gmra.mxu2 %v488_v9 }
  0xb7   : > { %v666_v13 = vpop.f32.mrf.mxu0 }
  0xb8   : > { %v679_v16 = vpop.f32.mrf.mxu1  ;;  %v667_v20 = vadd.f32 %v666_v13, %v523_v15 }
  0xb9   : > { %v680_v17 = vadd.f32 %v679_v16, %v524_v12 }
  0xba   : > { %v1920_v25 = vpack.c.bf16 %v667_v20, %v667_v20 }
  0xbb   : > { %v696_v18 = vpack.c.bf16 %v680_v17, %v680_v17 }
  0xbd   : > { %713 = vmatpush.bf16.xpose.msrb.mxu0 %v696_v18  ;;  %749 = vmatpush.bf16.xpose.msra.mxu3 %v696_v18 }
  0xbe   : > { %823 = vmatpush.bf16.xpose.msrb.mxu1 %v696_v18 }
  0xbf   : > { %v692_v21 = vpop.f32.mrf.mxu2  ;;  %v668_v23 = vpop.f32.mrf.mxu0 }
  0xc0   : > { %v693_v22 = vadd.f32 %v692_v21, %v525_v19  ;;  %v681_v26 = vpop.f32.mrf.mxu1 }
  0xc2   : > { %v767_v27 = vsel %vm737_vm5, %v693_v22, 0.0  ;;  %v732_v43 = vsel %vm700_vm4, %v693_v22, 0.0  ;;  %v841_v45 = vsel %vm1916_vm6, %v693_v22, 0.0  ;;  %v896_v49 = vsel %vm1937_vm14, %v693_v22, 0.0 }
  0xc3   : > { %v768_v28 = vpack.c.bf16 %v767_v27, %v767_v27  ;;  %v733_v44 = vpack.c.bf16 %v732_v43, %v732_v43  ;;  %v842_v46 = vpack.c.bf16 %v841_v45, %v841_v45  ;;  %v897_v51 = vpack.c.bf16 %v896_v49, %v896_v49  ;;  %v1572_v43 = vld [vmem:[%s2016_s3] sm:$0xff] }
  0xc4   : > { %1436 = vmatmul.msk.bf16.vlgmr.msrb.gmra.mxu0 %vm1434_vm7, %v1920_v25  ;;  %1439 = vmatmul.msk.bf16.vlgmr.msra.gmra.mxu3 %vm1437_vm8, %v1920_v25 }
  0xc5   : > { %v775_v29 = vsel %vm773_vm9, %v768_v28, 0  ;;  %1444 = vmatmul.msk.bf16.vlgmr.msrb.gmra.mxu1 %vm1442_vm10, %v1920_v25  ;;  %v794_v48 = vsel %vm773_vm9, %v733_v44, 0  ;;  %v848_v50 = vsel %vm773_vm9, %v842_v46, 0  ;;  %v903_v53 = vsel %vm773_vm9, %v897_v51, 0 }
  0xc6   : > { %784 = vmatpush.bf16.msrb.mxu3 %v775_v29  ;;  %803 = vmatpush.bf16.msra.mxu0 %v794_v48 }
  0xc7   : > { %v694_v30 = vpop.f32.mrf.mxu2  ;;  %857 = vmatpush.bf16.msrb.mxu2 %v848_v50  ;;  %v1639_v50 = vld [vmem:[%s2017_s4] ss:$0 sm:$0xff] }
  0xc8   : > { %v1579_v30 = vld [vmem:[%s2016_s3 + $0x38] sm:$0xff] }
  0xc9   : > { %988 = vmatpush.bf16.msra.mxu1 %v1579_v30 }
  0xca   : > { %878 = vmatpush.bf16.xpose.msra.mxu3 %v696_v18  ;;  %912 = vmatpush.bf16.msrb.mxu0 %v903_v53 }
 0x141   : > { %v715_v31 = vpop.f32.mrf.mxu0 }
 0x142   : > { %v719_v32 = vmul.f32 0.35355338, %v715_v31  ;;  %v825_v33 = vpop.f32.mrf.mxu1  ;;  %v1578_v31 = vld [vmem:[%s2016_s3 + $0x30] sm:$0xff] }
 0x143   : > { %v829_v36 = vmul.f32 0.35355338, %v825_v33  ;;  %989 = vmatpush.bf16.msra.mxu1 %v1578_v31 }
 0x144   : > { %v721_v34 = vsel %vm720_vm11, %v719_v32, -inf }
 0x145   : > { %722 = vmax.xlane.f32.xlu1 %v721_v34  ;;  %v830_v41 = vsel %vm720_vm11, %v829_v36, -inf  ;;  %v1576_v34 = vld [vmem:[%s2016_s3 + $0x20] sm:$0xff] }
 0x147   : > { %v751_v35 = vpop.f32.mrf.mxu3 }
 0x148   : > { %v755_v37 = vmul.f32 0.35355338, %v751_v35 }
 0x149   : > { %v717_v38 = vpop.f32.mrf.mxu0 }
 0x14a   : > { %v827_v39 = vpop.f32.mrf.mxu1  ;;  %v756_v40 = vsel %vm720_vm11, %v755_v37, -inf }
 0x14b   : > { %757 = vmax.xlane.f32.xlu0 %v756_v40  ;;  %v1574_v39 = vld [vmem:[%s2016_s3 + $0x10] sm:$0xff]  ;;  %v1573_v40 = vld [vmem:[%s2016_s3 + $0x8] sm:$0xff] }
 0x14d   : > { %831 = vmax.xlane.f32.xlu1 %v830_v41 }
 0x14f   : > { %v753_v42 = vpop.f32.mrf.mxu3 }
 0x1b8   : > { %v723_v52 = vpop.xlane.xlu1 %722 }
 0x1b9   : > { %v724_v12 = vsub.f32 %v719_v32, %v723_v52  ;;  %v1577_v32 = vld [vmem:[%s2016_s3 + $0x28] sm:$0xff] }
 0x1ba   : > { %990 = vmatpush.bf16.msra.mxu1 %v1577_v32 }
 0x1bb   : > { %v725_v13 = vmul.f32 1.442695, %v724_v12 }
 0x1be   : > { %v758_v54 = vpop.xlane.xlu0 %757  ;;  %991 = vmatpush.bf16.msra.mxu1 %v1576_v34 }
 0x1bf   : > { %v759_v55 = vsub.f32 %v755_v37, %v758_v54 }
 0x1c0   : > { %v832_v56 = vpop.xlane.xlu1 %831 }
 0x1c1   : > { %v760_v57 = vmul.f32 1.442695, %v759_v55  ;;  %v833_v58 = vsub.f32 %v829_v36, %v832_v56  ;;  %v1575_v36 = vld [vmem:[%s2016_s3 + $0x18] sm:$0xff] }
 0x1c2   : > { %992 = vmatpush.bf16.msra.mxu1 %v1575_v36  ;;  %v1587_v56 = vld [vmem:[#allocation4 + $0x38] sm:$0xff] }
 0x1c3   : > { %1646 = vpow2.f32 %v760_v57  ;;  %v834_v59 = vmul.f32 1.442695, %v833_v58  ;;  %1103 = vmatpush.bf16.msra.mxu2 %v1587_v56  ;;  %v1586_v57 = vld [vmem:[#allocation4 + $0x30] sm:$0xff]  ;;  %v1585_v58 = vld [vmem:[#allocation4 + $0x28] sm:$0xff] }
 0x1c5   : > { %1648 = vpow2.f32 %v834_v59  ;;  %v1584_v59 = vld [vmem:[#allocation4 + $0x20] sm:$0xff] }
 0x1c6   : > { %993 = vmatpush.bf16.msra.mxu1 %v1574_v39 }
 0x1c7   : > { %1104 = vmatpush.bf16.msra.mxu2 %v1586_v57 }
 0x1c9   : > { %v1647_v60 = vpop.eup %1646 }
 0x1ca   : > { %v762_v61 = vsel %vm720_vm11, %v1647_v60, 0.0  ;;  %994 = vmatpush.bf16.msra.mxu1 %v1573_v40 }
 0x1cb   : > { %763 = vadd.xlane.f32.xlu0 %v762_v61  ;;  %v1649_v62 = vpop.eup %1648  ;;  %1105 = vmatpush.bf16.msra.mxu2 %v1585_v58  ;;  %v1582_v61 = vld [vmem:[#allocation4 + $0x10] sm:$0xff] }
 0x1cc   : > { %v836_v63 = vsel %vm720_vm11, %v1649_v62, 0.0 }
 0x1ce   : > { %995 = vmatpush.bf16.msra.mxu1 %v1572_v43  ;;  %v1643_v43 = vld [vmem:[%s2023_s10] ss:$0 sm:$0xff] }
 0x1cf   : > { %1106 = vmatpush.bf16.msra.mxu2 %v1584_v59 }
 0x1d3   : > { %837 = vadd.xlane.f32.xlu0 %v836_v63  ;;  %v1580_v63 = vld [vmem:[#allocation4] sm:$0xff] }
 0x23e   : > { %v764_v0 = vpop.xlane.xlu0 %763 }
 0x23f   : > { %1650 = vrcp.f32 %v764_v0 }
 0x245   : > { %v1651_v1 = vpop.eup %1650 }
 0x246   : > { %v766_v2 = vmul.f32 %v1651_v1, %v1647_v60  ;;  %v838_v3 = vpop.xlane.xlu0 %837  ;;  %v1583_v60 = vld [vmem:[#allocation4 + $0x18] sm:$0xff] }
 0x247   : > { %1652 = vrcp.f32 %v838_v3  ;;  %1107 = vmatpush.bf16.msra.mxu2 %v1583_v60 }
 0x248   : > { %v769_v4 = vpack.c.bf16 %v766_v2, %v766_v2  ;;  %1654 = vpow2.f32 %v725_v13 }
 0x24a   : > { %1440 = vmatmul.msk.bf16.vlgmr.msrb.gmra.mxu3 %vm720_vm11, %v769_v4  ;;  %v1595_v4 = vld [vmem:[#allocation6 + $0x38] sm:$0xff] }
 0x24b   : > { %1108 = vmatpush.bf16.msra.mxu2 %v1582_v61  ;;  %1194 = vmatpush.bf16.msrb.mxu3 %v1595_v4 }
 0x24d   : > { %v1653_v5 = vpop.eup %1652 }
 0x24e   : > { %v840_v7 = vmul.f32 %v1653_v5, %v1649_v62  ;;  %v1655_v18 = vpop.eup %1654  ;;  %v1581_v62 = vld [vmem:[#allocation4 + $0x8] sm:$0xff] }
 0x24f   : > { %v727_v20 = vsel %vm720_vm11, %v1655_v18, 0.0  ;;  %1109 = vmatpush.bf16.msra.mxu2 %v1581_v62 }
 0x250   : > { %v843_v8 = vpack.c.bf16 %v840_v7, %v840_v7  ;;  %v1594_v7 = vld [vmem:[#allocation6 + $0x30] sm:$0xff] }
 0x251   : > { %1195 = vmatpush.bf16.msrb.mxu3 %v1594_v7 }
 0x252   : > { %1445 = vmatmul.msk.bf16.vlgmr.msrb.gmra.mxu2 %vm720_vm11, %v843_v8 }
 0x253   : > { %1110 = vmatpush.bf16.msra.mxu2 %v1580_v63  ;;  %v1644_v63 = vld [vmem:[%s2024_s11] ss:$0 sm:$0xff] }
 0x25a   : > { %1448 = vmatmul.msk.bf16.vlgmr.msra.gmra.mxu3 %vm1446_vm15, %v1920_v25 }
 0x2cd   : > { %v786_v9 = vpop.f32.mrf.mxu3 }
 0x2d5   : > { %v788_v10 = vpop.f32.mrf.mxu3  ;;  %v859_v11 = vpop.f32.mrf.mxu2 }
 0x2dd   : > { %v861_v14 = vpop.f32.mrf.mxu2  ;;  %v880_v15 = vpop.f32.mrf.mxu3 }
 0x2de   : > { %v884_v16 = vmul.f32 0.35355338, %v880_v15 }
 0x2e0   : > { %v885_v17 = vsel %vm720_vm11, %v884_v16, -inf }
 0x2e1   : > { %886 = vmax.xlane.f32.xlu2 %v885_v17 }
 0x2e5   : > { %v882_v19 = vpop.f32.mrf.mxu3 }
 0x2e6   : > { %v1641_v19 = vld [vmem:[%s2019_s6] ss:$0 sm:$0xff] }
 0x2e9   : > { %728 = vadd.xlane.f32.xlu2 %v727_v20 }
 0x354   : > { %v887_v21 = vpop.xlane.xlu2 %886 }
 0x355   : > { %v888_v22 = vsub.f32 %v884_v16, %v887_v21  ;;  %v1640_v16 = vld [vmem:[%s2018_s5] ss:$0 sm:$0xff] }
 0x357   : > { %v889_v23 = vmul.f32 1.442695, %v888_v22 }
 0x359   : > { %1656 = vpow2.f32 %v889_v23  ;;  %v1593_v23 = vld [vmem:[#allocation6 + $0x28] sm:$0xff] }
 0x35a   : > { %1196 = vmatpush.bf16.msrb.mxu3 %v1593_v23 }
 0x35c   : > { %v729_v24 = vpop.xlane.xlu2 %728 }
 0x35d   : > { %1658 = vrcp.f32 %v729_v24  ;;  %v1592_v24 = vld [vmem:[#allocation6 + $0x20] sm:$0xff] }
 0x35e   : > { %1197 = vmatpush.bf16.msrb.mxu3 %v1592_v24 }
 0x35f   : > { %v1657_v25 = vpop.eup %1656 }
 0x360   : > { %v891_v26 = vsel %vm720_vm11, %v1657_v25, 0.0 }
 0x361   : > { %892 = vadd.xlane.f32.xlu1 %v891_v26  ;;  %v1590_v26 = vld [vmem:[#allocation6 + $0x10] sm:$0xff] }
 0x363   : > { %v1659_v27 = vpop.eup %1658 }
 0x364   : > { %v731_v28 = vmul.f32 %v1659_v27, %v1655_v18  ;;  %v1589_v27 = vld [vmem:[#allocation6 + $0x8] sm:$0xff] }
 0x366   : > { %v734_v29 = vpack.c.bf16 %v731_v28, %v731_v28  ;;  %v1588_v28 = vld [vmem:[#allocation6] sm:$0xff] }
 0x368   : > { %1441 = vmatmul.msk.bf16.vlgmr.msra.gmra.mxu0 %vm720_vm11, %v734_v29  ;;  %v1642_v29 = vld [vmem:[%s2021_s8] ss:$0 sm:$0xff] }
 0x3d4   : > { %v893_v33 = vpop.xlane.xlu1 %892 }
 0x3d5   : > { %1660 = vrcp.f32 %v893_v33 }
 0x3db   : > { %v1661_v35 = vpop.eup %1660 }
 0x3dc   : > { %v895_v37 = vmul.f32 %v1661_v35, %v1657_v25  ;;  %v1591_v25 = vld [vmem:[#allocation6 + $0x18] sm:$0xff] }
 0x3dd   : > { %1198 = vmatpush.bf16.msrb.mxu3 %v1591_v25 }
 0x3de   : > { %v898_v38 = vpack.c.bf16 %v895_v37, %v895_v37 }
 0x3e0   : > { %1449 = vmatmul.msk.bf16.vlgmr.msrb.gmra.mxu0 %vm720_vm11, %v898_v38 }
 0x3e1   : > { %1199 = vmatpush.bf16.msrb.mxu3 %v1590_v26 }
 0x3e5   : > { %v805_v41 = vpop.f32.mrf.mxu0  ;;  %1200 = vmatpush.bf16.msrb.mxu3 %v1589_v27 }
 0x3e6   : > { %v806_v44 = vadd.f32 %v805_v41, %v786_v9 }
 0x3e8   : > { %v863_v45 = vadd.f32 %v859_v11, %v806_v44 }
 0x3e9   : > { %1201 = vmatpush.bf16.msrb.mxu3 %v1588_v28 }
 0x3ed   : > { %v807_v42 = vpop.f32.mrf.mxu0 }
 0x45d   : > { %v914_v46 = vpop.f32.mrf.mxu0 }
 0x45e   : > { %v918_v47 = vadd.f32 %v914_v46, %v863_v45 }
 0x460   : > { %v919_v48 = vpack.c.bf16 %v918_v47, %v918_v47 }
 0x462   : > { %996 = vmatmul.bf16.vlgmr.msra.gmra.mxu1 %v919_v48 }
 0x465   : > { %v916_v49 = vpop.f32.mrf.mxu0 }
 0x4df   : > { %v997_v51 = vpop.f32.mrf.mxu1 }
 0x4e0   : > { %v998_v52 = vadd.f32 %v1639_v50, %v997_v51 }
 0x4e2   : > { %v1001_v53 = vadd.f32 %v998_v52, %v1909_v6 }
 0x4e4   : > { %1004 = vadd.xlane.f32.xlu2 %v1001_v53  ;;  %v1007_v54 = vmul.f32 %v1001_v53, %v1001_v53 }
 0x4e6   : > { %1008 = vadd.xlane.f32.xlu0 %v1007_v54 }
 0x4e7   : > { %v999_v55 = vpop.f32.mrf.mxu1 }
 0x557   : > { %v1005_v6 = vpop.xlane.xlu2 %1004 }
 0x558   : > { %v1006_v0 = vmul.f32 0.03125, %v1005_v6 }
 0x559   : > { %v1009_v1 = vpop.xlane.xlu0 %1008 }
 0x55a   : > { %v1011_v2 = vmul.f32 %v1006_v0, %v1006_v0  ;;  %v1010_v3 = vmul.f32 0.03125, %v1009_v1  ;;  %v1024_v15 = vsub.f32 %v1001_v53, %v1006_v0  ;;  %v1645_v0 = vld [vmem:[%s2025_s12] ss:$0 sm:$0xff] }
 0x55c   : > { %v1012_v5 = vsub.f32 %v1010_v3, %v1011_v2 }
 0x55e   : > { %v1013_v8 = vadd.f32 1e-05, %v1012_v5 }
 0x560   : > { %1662 = vrsqrt.f32 %v1013_v8  ;;  %vm1020_vm1 = vweird.f32 %v1013_v8 }
 0x566   : > { %v1663_v9 = vpop.eup %1662 }
 0x567   : > { %v1015_v10 = vmul.f32 %v1663_v9, %v1013_v8  ;;  %vm1021_vm0 = vweird.f32 %v1663_v9 }
 0x568   : > { %vm1022_vm2 = vmor %vm1020_vm1, %vm1021_vm0 }
 0x569   : > { %v1016_v11 = vmul.f32 %v1663_v9, %v1015_v10 }
 0x56b   : > { %v1017_v12 = vmul.f32 0.5, %v1016_v11 }
 0x56d   : > { %v1018_v13 = vsub.f32 1.5, %v1017_v12 }
 0x56f   : > { %v1019_v14 = vmul.f32 %v1663_v9, %v1018_v13 }
 0x571   : > { %v1023_v17 = vsel %vm1022_vm2, %v1663_v9, %v1019_v14 }
 0x572   : > { %v1025_v18 = vmul.f32 %v1024_v15, %v1023_v17 }
 0x574   : > { %v1029_v20 = vmul.f32 %v1640_v16, %v1025_v18 }
 0x576   : > { %v1033_v21 = vadd.f32 %v1641_v19, %v1029_v20 }
 0x578   : > { %v1034_v22 = vpack.c.bf16 %v1033_v21, %v1033_v21 }
 0x57a   : > { %1111 = vmatmul.bf16.vlgmr.msra.gmra.mxu2 %v1034_v22 }
 0x5fd   : > { %v1112_v30 = vpop.f32.mrf.mxu2 }
 0x5fe   : > { %v1113_v31 = vadd.f32 %v1642_v29, %v1112_v30 }
 0x600   : > { %v1117_v32 = vmul.f32 0.044715, %v1113_v31  ;;  %v1116_v39 = vmul.f32 0.5, %v1113_v31 }
 0x602   : > { %v1118_v33 = vmul.f32 %v1117_v32, %v1113_v31 }
 0x604   : > { %v1119_v34 = vmul.f32 %v1118_v33, %v1113_v31 }
 0x605   : > { %v1114_v35 = vpop.f32.mrf.mxu2 }
 0x606   : > { %v1120_v36 = vadd.f32 %v1119_v34, %v1113_v31 }
 0x608   : > { %v1121_v37 = vmul.f32 0.7978846, %v1120_v36 }
 0x60a   : > { %1664 = vtanh.f32 %v1121_v37 }
 0x610   : > { %v1665_v38 = vpop.eup %1664 }
 0x611   : > { %v1123_v40 = vadd.f32 1.0, %v1665_v38 }
 0x613   : > { %v1124_v41 = vmul.f32 %v1123_v40, %v1116_v39 }
 0x615   : > { %v1125_v42 = vpack.c.bf16 %v1124_v41, %v1124_v41 }
 0x617   : > { %1202 = vmatmul.bf16.vlgmr.msrb.gmra.mxu3 %v1125_v42 }
 0x69a   : > { %v1203_v44 = vpop.f32.mrf.mxu3 }
 0x69b   : > { %v1204_v45 = vadd.f32 %v1643_v43, %v1203_v44 }
 0x69d   : > { %v1207_v46 = vadd.f32 %v1204_v45, %v1033_v21 }
 0x69f   : > { %1210 = vadd.xlane.f32.xlu1 %v1207_v46  ;;  %v1213_v47 = vmul.f32 %v1207_v46, %v1207_v46 }
 0x6a1   : > { %1214 = vadd.xlane.f32.xlu2 %v1213_v47 }
 0x6a2   : > { %v1205_v48 = vpop.f32.mrf.mxu3 }
 0x712   : > { %v1211_v49 = vpop.xlane.xlu1 %1210 }
 0x713   : > { %v1212_v50 = vmul.f32 0.03125, %v1211_v49 }
 0x714   : > { %v1215_v51 = vpop.xlane.xlu2 %1214 }
 0x715   : > { %v1217_v52 = vmul.f32 %v1212_v50, %v1212_v50  ;;  %v1216_v53 = vmul.f32 0.03125, %v1215_v51  ;;  %v1230_v62 = vsub.f32 %v1207_v46, %v1212_v50 }
 0x717   : > { %v1218_v54 = vsub.f32 %v1216_v53, %v1217_v52 }
 0x719   : > { %v1219_v55 = vadd.f32 1e-05, %v1218_v54 }
 0x71b   : > { %1666 = vrsqrt.f32 %v1219_v55  ;;  %vm1226_vm4 = vweird.f32 %v1219_v55 }
 0x721   : > { %v1667_v56 = vpop.eup %1666 }
 0x722   : > { %v1221_v57 = vmul.f32 %v1667_v56, %v1219_v55  ;;  %vm1227_vm3 = vweird.f32 %v1667_v56 }
 0x723   : > { %vm1228_vm5 = vmor %vm1226_vm4, %vm1227_vm3 }
 0x724   : > { %v1222_v58 = vmul.f32 %v1667_v56, %v1221_v57 }
 0x726   : > { %v1223_v59 = vmul.f32 0.5, %v1222_v58 }
 0x728   : > { %v1224_v60 = vsub.f32 1.5, %v1223_v59 }
 0x72a   : > { %v1225_v61 = vmul.f32 %v1667_v56, %v1224_v60 }
 0x72c   : > { %v1229_v6 = vsel %vm1228_vm5, %v1667_v56, %v1225_v61 }
 0x72d   : > { %v1231_v1 = vmul.f32 %v1230_v62, %v1229_v6 }
 0x72f   : > { %v1235_v2 = vmul.f32 %v1644_v63, %v1231_v1 }
 0x731   : > { %v1239_v3 = vadd.f32 %v1645_v0, %v1235_v2 }
 0x733   : > { %1240 = vst [vmem:[%s485_s22] sm:$0xff] %v1239_v3 }
 0x734 PF: > { %s25_s25 = sadd.s32 1, %s1772_s25  }
 0x735   : > { %p22_p7 = scmp.ge.s32.totalorder %s25_s25, 4  }
 0x737   :  { %24 = sbr.rel (!%p22_p7) target bundleno = 4 (0x4), region = 115 }
 0x73c   :  { %1260 = vsyncpa [#allocation3], 1 }
 0x73d   :  { %1262 = vsyncpa [#allocation3 + $0x1], 1 }
 0x73e   :  { %1263 = vsyncpa [#allocation5], 1 }

</bundles_post_ra>
